<compile_context>
chip_gen: v7x
topology: tpu7x:2x2x1
jax: 0.10.0
libtpu: 0.0.40
codegen_flags: <defaults>
</compile_context>

<pallas_src>
import jax
import jax.numpy as jnp
from jax import lax
from jax.experimental import pallas as pl
from jax.experimental.pallas import tpu as pltpu

NUM_GROUPS = 32
EPS = 1e-5


# --------------------------------------------------------------------------
# Kernel
# --------------------------------------------------------------------------
def _make_attn_kernel(use_mask, inv_n):
    """Build the kernel body.

    use_mask: statically True when >1 batch element is lane-packed per block
              (an additive -1e30 mask keeps attention block-diagonal).
    inv_n:    1 / (group_size * W) GroupNorm normalizer (python float).
    """

    def kernel(x_ref, seg_ref, segT_ref, avg_ref, gamma_ref, beta_ref,
               w3_ref, b3_ref, wp_ref, bp_ref, *rest):
        if use_mask:
            mask_ref, out_ref = rest
        else:
            (out_ref,) = rest

        C, L = x_ref.shape                       # channels x (bt * W) lanes
        x = x_ref[...]                           # (C, L)   f32
        seg = seg_ref[...]                       # (L, bt)  f32 0/1 lane->batch
        segT = segT_ref[...]                     # (bt, L)  f32 0/1
        avg = avg_ref[...].astype(jnp.float32)   # (C, C)   0/1 group mixing
        gamma = gamma_ref[...]                   # (C, 1)   f32
        beta = beta_ref[...]                     # (C, 1)   f32
        w3 = w3_ref[...]                         # (3C, C)  bf16 (q rows pre-scaled)
        b3 = b3_ref[...]                         # (3C, 1)  f32  (q rows pre-scaled)
        wp = wp_ref[...]                         # (C, C)   bf16
        bp = bp_ref[...]                         # (C, 1)   f32

        # ---------------- GroupNorm: two-pass, f32 statistics ----------------
        # per-(channel, batch) sums over each batch's W lanes, then 0/1 group
        # mixing; the 1/(gs*W) scale is applied afterwards in f32.
        sum_cb = jnp.dot(x, seg, preferred_element_type=jnp.float32)       # (C, bt)
        mean_cb = jnp.dot(avg, sum_cb,
                          preferred_element_type=jnp.float32) * inv_n      # (C, bt)
        mean = jnp.dot(mean_cb, segT,
                       preferred_element_type=jnp.float32)                 # (C, L)
        xm = x - mean
        ss_cb = jnp.dot(xm * xm, seg, preferred_element_type=jnp.float32)  # (C, bt)
        var_cb = jnp.dot(avg, ss_cb,
                         preferred_element_type=jnp.float32) * inv_n       # (C, bt)
        scale_cb = lax.rsqrt(var_cb + EPS) * gamma                         # (C, bt)
        h = xm * jnp.dot(scale_cb, segT,
                         preferred_element_type=jnp.float32) + beta        # (C, L)

        # ------ fused q/k/v projection: one (3C,C)x(C,L) bf16 MXU matmul -----
        qkv = jnp.dot(w3, h.astype(jnp.bfloat16),
                      preferred_element_type=jnp.float32) + b3             # (3C, L)
        q = qkv[0:C].astype(jnp.bfloat16)        # softmax scale already folded in
        k = qkv[C:2 * C].astype(jnp.bfloat16)
        v = qkv[2 * C:3 * C].astype(jnp.bfloat16)

        # ------- attention over the spatial axis, block-diagonal in batch ----
        # logits[i, j] = sum_c q[c, i] * k[c, j]        (no materialized q.T)
        logits = lax.dot_general(q, k, (((0,), (0,)), ((), ())),
                                 preferred_element_type=jnp.float32)       # (L, L)
        if use_mask:
            logits = logits + mask_ref[...]      # -1e30 outside own batch block
        logits = logits - jnp.max(logits, axis=-1, keepdims=True)
        p = jnp.exp(logits)
        # approx reciprocal (EUP) + bf16 probabilities: accuracy knob (~1e-3).
        p = p * pl.reciprocal(jnp.sum(p, axis=-1, keepdims=True), approx=True)
        # h_attn[c, i] = sum_j v[c, j] * p[i, j]        (no materialized p.T)
        h_attn = lax.dot_general(v, p.astype(jnp.bfloat16),
                                 (((1,), (1,)), ((), ())),
                                 preferred_element_type=jnp.float32)       # (C, L)

        # ---------------- output projection + residual (f32) -----------------
        proj = jnp.dot(wp, h_attn.astype(jnp.bfloat16),
                       preferred_element_type=jnp.float32) + bp            # (C, L)
        out_ref[...] = (x + proj).astype(out_ref.dtype)

    return kernel


# --------------------------------------------------------------------------
# Generation-aware sizing
# --------------------------------------------------------------------------
def _tpu_budget():
    """(vmem_budget_bytes, vmem_limit_bytes, tensorcores_per_chip)."""
    capacity = None
    try:
        capacity = getattr(pltpu.get_tpu_info(), "vmem_capacity_bytes", None)
    except Exception:
        capacity = None
    kind = ""
    try:
        kind = jax.devices()[0].device_kind.lower()
    except Exception:
        pass
    if not capacity:
        # v7x TensorCores have 64 MiB of VMEM each; earlier parts have 128 MiB.
        capacity = (64 if ("7x" in kind or "v7" in kind) else 128) * 1024 * 1024
    # Chips whose "parallel" grid axes are split across 2 TensorCores.
    two_tc = any(t in kind for t in ("v4", "v5p", "7x", "v7"))
    budget = int(0.6 * capacity)                      # used for picking bt
    limit = min(int(0.8 * capacity), 112 * 1024 * 1024)
    return budget, limit, (2 if two_tc else 1)


def _pick_block_batch(B, C, W, vmem_budget, num_tc):
    """Batch elements packed per grid step (lane width = bt * W)."""

    def vmem_cost(bt):
        L = bt * W
        blocks = 2 * (2 * C * L * 4)                 # x + out blocks, double-buffered
        consts = 2 * (                               # constant inputs double-buffer too
            C * C * 2 + 3 * C * C * 2 + C * C * 2    # avg, w3, wp (bf16)
            + 6 * C * 4                              # gamma, beta, b3, bp
            + 2 * L * bt * 4                         # seg, segT
            + (L * L * 4 if bt > 1 else 0))          # additive block mask
        interm = (3 * C * L * 4                      # qkv f32 accumulator
                  + 4 * C * L * 4                    # xm / h / h_attn / proj f32
                  + 5 * C * L * 2                    # bf16 copies of h, q, k, v, h_attn
                  + L * L * 10)                      # logits f32 + p f32 + p bf16
        return blocks + consts + interm

    # Candidates: divisors of B whose lane width is 128-aligned (Mosaic block
    # constraint) or that cover the whole packed axis.
    cands = [bt for bt in range(1, B + 1)
             if B % bt == 0 and ((bt * W) % 128 == 0 or bt == B)]
    fitting = [bt for bt in cands if vmem_cost(bt) <= vmem_budget]
    pool = fitting if fitting else [min(cands)]
    if num_tc > 1:
        # Keep >= num_tc grid steps when possible so the "parallel" batch axis
        # can be split across TensorCores; on 1-TC chips just take the largest.
        split = [bt for bt in pool if B // bt >= num_tc]
        if split:
            pool = split
    return max(pool)


def _const_spec(a):
    nd = a.ndim
    return pl.BlockSpec(a.shape, lambda i: (0,) * nd)


# --------------------------------------------------------------------------
# Wrapper
# --------------------------------------------------------------------------
@jax.jit
def attn_block(x, gamma, beta, wq, bq, wk, bk, wv, bv, wp, bp):
    B, C, W = x.shape
    assert C % NUM_GROUPS == 0, "GroupNorm requires C % 32 == 0"
    gs = C // NUM_GROUPS

    vmem_budget, vmem_limit, num_tc = _tpu_budget()
    bt = _pick_block_batch(B, C, W, vmem_budget, num_tc)
    L = bt * W
    use_mask = bt > 1

    scale = jnp.float32(C ** -0.5)
    # Fused q/k/v projection weights (bf16 MXU inputs); the 1/sqrt(C) softmax
    # scale is folded into the q rows (weights and bias) once, here.
    w3 = jnp.concatenate([wq * scale, wk, wv], axis=0).astype(jnp.bfloat16)
    b3 = jnp.concatenate([bq * scale, bk, bv], axis=0).astype(jnp.float32)
    wp16 = wp.astype(jnp.bfloat16)

    # GroupNorm 0/1 group-mixing matrix (exact in bf16; scaled in-kernel in f32).
    gid = jnp.arange(C, dtype=jnp.int32) // gs
    avg = (gid[:, None] == gid[None, :]).astype(jnp.bfloat16)              # (C, C)

    # 0/1 lane-segment matrices mapping packed lanes <-> batch elements.
    lane_b = jnp.arange(L, dtype=jnp.int32) // W
    seg = (lane_b[:, None] ==
           jnp.arange(bt, dtype=jnp.int32)[None, :]).astype(jnp.float32)   # (L, bt)
    segT = jnp.transpose(seg)                                              # (bt, L)

    inputs = [seg, segT, avg, gamma.astype(jnp.float32),
              beta.astype(jnp.float32), w3, b3, wp16, bp.astype(jnp.float32)]
    in_specs = ([pl.BlockSpec((C, L), lambda i: (0, i))]
                + [_const_spec(a) for a in inputs])
    if use_mask:
        # Additive block-diagonal mask: 0 within a batch's lanes, -1e30 across.
        mask = jnp.where(lane_b[:, None] == lane_b[None, :],
                         jnp.float32(0), jnp.float32(-1e30))               # (L, L)
        inputs.append(mask)
        in_specs.append(_const_spec(mask))

    # Lane-pack (B, C, W) -> (C, B*W): channels on sublanes, bt*W positions on
    # lanes (lane-dense loads/stores, MXU-friendly N-dim).  Wrapper-side
    # transpose/reshape is layout plumbing handled by XLA.
    x_packed = jnp.transpose(x, (1, 0, 2)).reshape(C, B * W)

    out_packed = pl.pallas_call(
        _make_attn_kernel(use_mask, 1.0 / (gs * W)),
        out_shape=jax.ShapeDtypeStruct((C, B * W), x.dtype),
        grid_spec=pltpu.PrefetchScalarGridSpec(
            num_scalar_prefetch=0,
            grid=(B // bt,),
            in_specs=in_specs,
            out_specs=pl.BlockSpec((C, L), lambda i: (0, i)),
        ),
        compiler_params=pltpu.CompilerParams(
            dimension_semantics=("parallel",),
            vmem_limit_bytes=vmem_limit,
        ),
    )(x_packed, *inputs)

    return out_packed.reshape(C, B, W).transpose(1, 0, 2)


# --------------------------------------------------------------------------
# Pure-JAX reference and self-test
# --------------------------------------------------------------------------
def _reference(x, gamma, beta, wq, bq, wk, bk, wv, bv, wp, bp):
    """Pure-JAX f32 reference mirroring the PyTorch forward pass."""
    B, C, W = x.shape
    gs = C // NUM_GROUPS
    xg = x.reshape(B, NUM_GROUPS, gs * W)
    mean = xg.mean(axis=-1, keepdims=True)
    var = ((xg - mean) ** 2).mean(axis=-1, keepdims=True)
    h = ((xg - mean) / jnp.sqrt(var + EPS)).reshape(B, C, W)
    h = h * gamma.reshape(1, C, 1) + beta.reshape(1, C, 1)

    q = jnp.einsum('oc,bcw->bow', wq, h) + bq.reshape(1, C, 1)
    k = jnp.einsum('oc,bcw->bow', wk, h) + bk.reshape(1, C, 1)
    v = jnp.einsum('oc,bcw->bow', wv, h) + bv.reshape(1, C, 1)

    w = jnp.einsum('bcq,bck->bqk', q, k) * (C ** -0.5)
    w = jax.nn.softmax(w, axis=-1)
    h = jnp.einsum('bqk,bck->bcq', w, v)          # (B, C, W)
    h = jnp.einsum('oc,bcw->bow', wp, h) + bp.reshape(1, C, 1)
    return x + h


if __name__ == "__main__":
    B, C, W = 8, 64, 16          # C must be divisible by 32 (GroupNorm groups)
    key = jax.random.PRNGKey(0)
    keys = jax.random.split(key, 12)

    x = jax.random.normal(keys[0], (B, C, W), dtype=jnp.float32)
    gamma = 1.0 + 0.1 * jax.random.normal(keys[1], (C, 1), dtype=jnp.float32)
    beta = 0.1 * jax.random.normal(keys[2], (C, 1), dtype=jnp.float32)

    wscale = 1.0 / (C ** 0.5)
    wq = wscale * jax.random.normal(keys[3], (C, C), dtype=jnp.float32)
    bq = 0.01 * jax.random.normal(keys[4], (C, 1), dtype=jnp.float32)
    wk = wscale * jax.random.normal(keys[5], (C, C), dtype=jnp.float32)
    bk = 0.01 * jax.random.normal(keys[6], (C, 1), dtype=jnp.float32)
    wv = wscale * jax.random.normal(keys[7], (C, C), dtype=jnp.float32)
    bv = 0.01 * jax.random.normal(keys[8], (C, 1), dtype=jnp.float32)
    wp = wscale * jax.random.normal(keys[9], (C, C), dtype=jnp.float32)
    bp = 0.01 * jax.random.normal(keys[10], (C, 1), dtype=jnp.float32)

    out = attn_block(x, gamma, beta, wq, bq, wk, bk, wv, bv, wp, bp)
    out = jax.block_until_ready(out)

    ref = _reference(x, gamma.squeeze(-1), beta.squeeze(-1),
                     wq, bq.squeeze(-1), wk, bk.squeeze(-1),
                     wv, bv.squeeze(-1), wp, bp.squeeze(-1))
    assert out.shape == (B, C, W)
    # bf16 MXU inputs (f32 accumulation) -> compare against the f32 reference
    # with a bf16-appropriate tolerance.
    assert jnp.allclose(out, ref, atol=6e-2, rtol=6e-2), "mismatch vs reference"

    print("KERNEL_OK")
</pallas_src>

<mosaic_0001>
module attributes {stable_mosaic.version = 11 : i64} {
  func.func @kernel(%arg0: i32, %arg1: memref<64x128xf32, #tpu.memory_space<vmem>>, %arg2: memref<128x8xf32, #tpu.memory_space<vmem>>, %arg3: memref<8x128xf32, #tpu.memory_space<vmem>>, %arg4: memref<64x64xbf16, #tpu.memory_space<vmem>>, %arg5: memref<64x1xf32, #tpu.memory_space<vmem>>, %arg6: memref<64x1xf32, #tpu.memory_space<vmem>>, %arg7: memref<192x64xbf16, #tpu.memory_space<vmem>>, %arg8: memref<192x1xf32, #tpu.memory_space<vmem>>, %arg9: memref<64x64xbf16, #tpu.memory_space<vmem>>, %arg10: memref<64x1xf32, #tpu.memory_space<vmem>>, %arg11: memref<128x128xf32, #tpu.memory_space<vmem>>, %arg12: memref<64x128xf32, #tpu.memory_space<vmem>>) attributes {dimension_semantics = [#tpu.dimension_semantics<parallel>], iteration_bounds = array<i64: 1>, scalar_prefetch = 0 : i64, scratch_operands = 0 : i64, tpu.core_type = #tpu.core_type<tc>, window_params = [{transform_indices = @transform_0, window_bounds = array<i64: 64, 128>}, {pipeline_mode = #tpu.pipeline_mode<synchronous>, transform_indices = @transform_1, window_bounds = array<i64: 128, 8>}, {pipeline_mode = #tpu.pipeline_mode<synchronous>, transform_indices = @transform_2, window_bounds = array<i64: 8, 128>}, {pipeline_mode = #tpu.pipeline_mode<synchronous>, transform_indices = @transform_3, window_bounds = array<i64: 64, 64>}, {pipeline_mode = #tpu.pipeline_mode<synchronous>, transform_indices = @transform_4, window_bounds = array<i64: 64, 1>}, {pipeline_mode = #tpu.pipeline_mode<synchronous>, transform_indices = @transform_5, window_bounds = array<i64: 64, 1>}, {pipeline_mode = #tpu.pipeline_mode<synchronous>, transform_indices = @transform_6, window_bounds = array<i64: 192, 64>}, {pipeline_mode = #tpu.pipeline_mode<synchronous>, transform_indices = @transform_7, window_bounds = array<i64: 192, 1>}, {pipeline_mode = #tpu.pipeline_mode<synchronous>, transform_indices = @transform_8, window_bounds = array<i64: 64, 64>}, {pipeline_mode = #tpu.pipeline_mode<synchronous>, transform_indices = @transform_9, window_bounds = array<i64: 64, 1>}, {pipeline_mode = #tpu.pipeline_mode<synchronous>, transform_indices = @transform_10, window_bounds = array<i64: 128, 128>}, {transform_indices = @transform_11, window_bounds = array<i64: 64, 128>}]} {
    %c0 = arith.constant 0 : index
    %c0_0 = arith.constant 0 : index
    %0 = vector.load %arg1[%c0, %c0_0] : memref<64x128xf32, #tpu.memory_space<vmem>>, vector<64x128xf32>
    %c0_1 = arith.constant 0 : index
    %c0_2 = arith.constant 0 : index
    %1 = vector.load %arg2[%c0_1, %c0_2] : memref<128x8xf32, #tpu.memory_space<vmem>>, vector<128x8xf32>
    %c0_3 = arith.constant 0 : index
    %c0_4 = arith.constant 0 : index
    %2 = vector.load %arg3[%c0_3, %c0_4] : memref<8x128xf32, #tpu.memory_space<vmem>>, vector<8x128xf32>
    %c0_5 = arith.constant 0 : index
    %c0_6 = arith.constant 0 : index
    %3 = vector.load %arg4[%c0_5, %c0_6] : memref<64x64xbf16, #tpu.memory_space<vmem>>, vector<64x64xbf16>
    %4 = arith.extf %3 : vector<64x64xbf16> to vector<64x64xf32>
    %c0_7 = arith.constant 0 : index
    %c0_8 = arith.constant 0 : index
    %5 = vector.load %arg5[%c0_7, %c0_8] : memref<64x1xf32, #tpu.memory_space<vmem>>, vector<64x1xf32>
    %c0_9 = arith.constant 0 : index
    %c0_10 = arith.constant 0 : index
    %6 = vector.load %arg6[%c0_9, %c0_10] : memref<64x1xf32, #tpu.memory_space<vmem>>, vector<64x1xf32>
    %c0_11 = arith.constant 0 : index
    %c0_12 = arith.constant 0 : index
    %7 = vector.load %arg7[%c0_11, %c0_12] : memref<192x64xbf16, #tpu.memory_space<vmem>>, vector<192x64xbf16>
    %c0_13 = arith.constant 0 : index
    %c0_14 = arith.constant 0 : index
    %8 = vector.load %arg8[%c0_13, %c0_14] : memref<192x1xf32, #tpu.memory_space<vmem>>, vector<192x1xf32>
    %c0_15 = arith.constant 0 : index
    %c0_16 = arith.constant 0 : index
    %9 = vector.load %arg9[%c0_15, %c0_16] : memref<64x64xbf16, #tpu.memory_space<vmem>>, vector<64x64xbf16>
    %c0_17 = arith.constant 0 : index
    %c0_18 = arith.constant 0 : index
    %10 = vector.load %arg10[%c0_17, %c0_18] : memref<64x1xf32, #tpu.memory_space<vmem>>, vector<64x1xf32>
    %cst = arith.constant dense<0.000000e+00> : vector<64x8xf32>
    %11 = tpu.matmul %0, %1, %cst {dimension_numbers = #tpu.dot_dimension_numbers<[1], [0], [0], [1], [0, 0, 1, 1], [], []>} : vector<64x128xf32>, vector<128x8xf32>, vector<64x8xf32> -> vector<64x8xf32>
    %cst_19 = arith.constant dense<0.000000e+00> : vector<64x8xf32>
    %12 = tpu.matmul %4, %11, %cst_19 {dimension_numbers = #tpu.dot_dimension_numbers<[1], [0], [0], [1], [0, 0, 1, 1], [], []>} : vector<64x64xf32>, vector<64x8xf32>, vector<64x8xf32> -> vector<64x8xf32>
    %cst_20 = arith.constant 3.125000e-02 : f32
    %13 = vector.broadcast %cst_20 : f32 to vector<64x8xf32>
    %14 = arith.mulf %12, %13 : vector<64x8xf32>
    %cst_21 = arith.constant dense<0.000000e+00> : vector<64x128xf32>
    %15 = tpu.matmul %14, %2, %cst_21 {dimension_numbers = #tpu.dot_dimension_numbers<[1], [0], [0], [1], [0, 0, 1, 1], [], []>} : vector<64x8xf32>, vector<8x128xf32>, vector<64x128xf32> -> vector<64x128xf32>
    %16 = arith.subf %0, %15 : vector<64x128xf32>
    %17 = arith.mulf %16, %16 : vector<64x128xf32>
    %cst_22 = arith.constant dense<0.000000e+00> : vector<64x8xf32>
    %18 = tpu.matmul %17, %1, %cst_22 {dimension_numbers = #tpu.dot_dimension_numbers<[1], [0], [0], [1], [0, 0, 1, 1], [], []>} : vector<64x128xf32>, vector<128x8xf32>, vector<64x8xf32> -> vector<64x8xf32>
    %cst_23 = arith.constant dense<0.000000e+00> : vector<64x8xf32>
    %19 = tpu.matmul %4, %18, %cst_23 {dimension_numbers = #tpu.dot_dimension_numbers<[1], [0], [0], [1], [0, 0, 1, 1], [], []>} : vector<64x64xf32>, vector<64x8xf32>, vector<64x8xf32> -> vector<64x8xf32>
    %cst_24 = arith.constant 3.125000e-02 : f32
    %20 = vector.broadcast %cst_24 : f32 to vector<64x8xf32>
    %21 = arith.mulf %19, %20 : vector<64x8xf32>
    %cst_25 = arith.constant 9.99999974E-6 : f32
    %22 = vector.broadcast %cst_25 : f32 to vector<64x8xf32>
    %23 = arith.addf %21, %22 : vector<64x8xf32>
    %24 = math.rsqrt %23 : vector<64x8xf32>
    %25 = vector.broadcast %5 : vector<64x1xf32> to vector<64x8xf32>
    %26 = arith.mulf %24, %25 : vector<64x8xf32>
    %cst_26 = arith.constant dense<0.000000e+00> : vector<64x128xf32>
    %27 = tpu.matmul %26, %2, %cst_26 {dimension_numbers = #tpu.dot_dimension_numbers<[1], [0], [0], [1], [0, 0, 1, 1], [], []>} : vector<64x8xf32>, vector<8x128xf32>, vector<64x128xf32> -> vector<64x128xf32>
    %28 = arith.mulf %16, %27 : vector<64x128xf32>
    %29 = vector.broadcast %6 : vector<64x1xf32> to vector<64x128xf32>
    %30 = arith.addf %28, %29 : vector<64x128xf32>
    %31 = arith.truncf %30 : vector<64x128xf32> to vector<64x128xbf16>
    %cst_27 = arith.constant dense<0.000000e+00> : vector<192x128xf32>
    %32 = tpu.matmul %7, %31, %cst_27 {dimension_numbers = #tpu.dot_dimension_numbers<[1], [0], [0], [1], [0, 0, 1, 1], [], []>} : vector<192x64xbf16>, vector<64x128xbf16>, vector<192x128xf32> -> vector<192x128xf32>
    %33 = vector.broadcast %8 : vector<192x1xf32> to vector<192x128xf32>
    %34 = arith.addf %32, %33 : vector<192x128xf32>
    %35 = vector.extract_strided_slice %34 {offsets = [0, 0], sizes = [64, 128], strides = [1, 1]} : vector<192x128xf32> to vector<64x128xf32>
    %36 = arith.truncf %35 : vector<64x128xf32> to vector<64x128xbf16>
    %37 = vector.extract_strided_slice %34 {offsets = [64, 0], sizes = [64, 128], strides = [1, 1]} : vector<192x128xf32> to vector<64x128xf32>
    %38 = arith.truncf %37 : vector<64x128xf32> to vector<64x128xbf16>
    %39 = vector.extract_strided_slice %34 {offsets = [128, 0], sizes = [64, 128], strides = [1, 1]} : vector<192x128xf32> to vector<64x128xf32>
    %40 = arith.truncf %39 : vector<64x128xf32> to vector<64x128xbf16>
    %cst_28 = arith.constant dense<0.000000e+00> : vector<128x128xf32>
    %41 = tpu.matmul %36, %38, %cst_28 {dimension_numbers = #tpu.dot_dimension_numbers<[0], [0], [1], [1], [0, 1, 1, 1], [], []>} : vector<64x128xbf16>, vector<64x128xbf16>, vector<128x128xf32> -> vector<128x128xf32>
    %c0_29 = arith.constant 0 : index
    %c0_30 = arith.constant 0 : index
    %42 = vector.load %arg11[%c0_29, %c0_30] : memref<128x128xf32, #tpu.memory_space<vmem>>, vector<128x128xf32>
    %43 = arith.addf %41, %42 : vector<128x128xf32>
    %cst_31 = arith.constant dense<0xFF800000> : vector<128xf32>
    %44 = vector.multi_reduction <maximumf>, %43, %cst_31 [1] : vector<128x128xf32> to vector<128xf32>
    %45 = vector.shape_cast %44 : vector<128xf32> to vector<128x1xf32>
    %46 = vector.broadcast %45 : vector<128x1xf32> to vector<128x128xf32>
    %47 = arith.subf %43, %46 : vector<128x128xf32>
    %48 = math.exp %47 : vector<128x128xf32>
    %cst_32 = arith.constant dense<0.000000e+00> : vector<128xf32>
    %49 = vector.multi_reduction <add>, %48, %cst_32 [1] : vector<128x128xf32> to vector<128xf32>
    %50 = vector.shape_cast %49 : vector<128xf32> to vector<128x1xf32>
    %51 = tpu.reciprocal %50 {approx = true} : vector<128x1xf32> -> vector<128x1xf32>
    %52 = vector.broadcast %51 : vector<128x1xf32> to vector<128x128xf32>
    %53 = arith.mulf %48, %52 : vector<128x128xf32>
    %54 = arith.truncf %53 : vector<128x128xf32> to vector<128x128xbf16>
    %cst_33 = arith.constant dense<0.000000e+00> : vector<64x128xf32>
    %55 = tpu.matmul %40, %54, %cst_33 {dimension_numbers = #tpu.dot_dimension_numbers<[1], [1], [0], [0], [0, 0, 1, 0], [], []>} : vector<64x128xbf16>, vector<128x128xbf16>, vector<64x128xf32> -> vector<64x128xf32>
    %56 = arith.truncf %55 : vector<64x128xf32> to vector<64x128xbf16>
    %cst_34 = arith.constant dense<0.000000e+00> : vector<64x128xf32>
    %57 = tpu.matmul %9, %56, %cst_34 {dimension_numbers = #tpu.dot_dimension_numbers<[1], [0], [0], [1], [0, 0, 1, 1], [], []>} : vector<64x64xbf16>, vector<64x128xbf16>, vector<64x128xf32> -> vector<64x128xf32>
    %58 = vector.broadcast %10 : vector<64x1xf32> to vector<64x128xf32>
    %59 = arith.addf %57, %58 : vector<64x128xf32>
    %60 = arith.addf %0, %59 : vector<64x128xf32>
    %c0_35 = arith.constant 0 : index
    %c0_36 = arith.constant 0 : index
    %61 = vector.load %arg12[%c0_35, %c0_36] : memref<64x128xf32, #tpu.memory_space<vmem>>, vector<64x128xf32>
    tpu.vector_store %arg12[%c0_35, %c0_36], %60 {strides = array<i32>} : memref<64x128xf32, #tpu.memory_space<vmem>>, vector<64x128xf32>,
    return
  }
  func.func @transform_0(%arg0: i32) -> (i32, i32) {
    %c0_i32 = arith.constant 0 : i32
    %c0_i32_0 = arith.constant 0 : i32
    return %c0_i32, %arg0 : i32, i32
  }
  func.func @transform_1(%arg0: i32) -> (i32, i32) {
    %c0_i32 = arith.constant 0 : i32
    %c0_i32_0 = arith.constant 0 : i32
    %c0_i32_1 = arith.constant 0 : i32
    return %c0_i32, %c0_i32_0 : i32, i32
  }
  func.func @transform_2(%arg0: i32) -> (i32, i32) {
    %c0_i32 = arith.constant 0 : i32
    %c0_i32_0 = arith.constant 0 : i32
    %c0_i32_1 = arith.constant 0 : i32
    return %c0_i32, %c0_i32_0 : i32, i32
  }
  func.func @transform_3(%arg0: i32) -> (i32, i32) {
    %c0_i32 = arith.constant 0 : i32
    %c0_i32_0 = arith.constant 0 : i32
    %c0_i32_1 = arith.constant 0 : i32
    return %c0_i32, %c0_i32_0 : i32, i32
  }
  func.func @transform_4(%arg0: i32) -> (i32, i32) {
    %c0_i32 = arith.constant 0 : i32
    %c0_i32_0 = arith.constant 0 : i32
    %c0_i32_1 = arith.constant 0 : i32
    return %c0_i32, %c0_i32_0 : i32, i32
  }
  func.func @transform_5(%arg0: i32) -> (i32, i32) {
    %c0_i32 = arith.constant 0 : i32
    %c0_i32_0 = arith.constant 0 : i32
    %c0_i32_1 = arith.constant 0 : i32
    return %c0_i32, %c0_i32_0 : i32, i32
  }
  func.func @transform_6(%arg0: i32) -> (i32, i32) {
    %c0_i32 = arith.constant 0 : i32
    %c0_i32_0 = arith.constant 0 : i32
    %c0_i32_1 = arith.constant 0 : i32
    return %c0_i32, %c0_i32_0 : i32, i32
  }
  func.func @transform_7(%arg0: i32) -> (i32, i32) {
    %c0_i32 = arith.constant 0 : i32
    %c0_i32_0 = arith.constant 0 : i32
    %c0_i32_1 = arith.constant 0 : i32
    return %c0_i32, %c0_i32_0 : i32, i32
  }
  func.func @transform_8(%arg0: i32) -> (i32, i32) {
    %c0_i32 = arith.constant 0 : i32
    %c0_i32_0 = arith.constant 0 : i32
    %c0_i32_1 = arith.constant 0 : i32
    return %c0_i32, %c0_i32_0 : i32, i32
  }
  func.func @transform_9(%arg0: i32) -> (i32, i32) {
    %c0_i32 = arith.constant 0 : i32
    %c0_i32_0 = arith.constant 0 : i32
    %c0_i32_1 = arith.constant 0 : i32
    return %c0_i32, %c0_i32_0 : i32, i32
  }
  func.func @transform_10(%arg0: i32) -> (i32, i32) {
    %c0_i32 = arith.constant 0 : i32
    %c0_i32_0 = arith.constant 0 : i32
    %c0_i32_1 = arith.constant 0 : i32
    return %c0_i32, %c0_i32_0 : i32, i32
  }
  func.func @transform_11(%arg0: i32) -> (i32, i32) {
    %c0_i32 = arith.constant 0 : i32
    %c0_i32_0 = arith.constant 0 : i32
    return %c0_i32, %arg0 : i32, i32
  }
}

</mosaic_0001>

<bundles_post_ra>
// kernel: attn_block.1
= control target key start
LH: loop header
LB: loop body
LE: loop exit
PB: predicated region body
PF: predicated region fallthrough
CT: control target
= control target key end

     0   :  { %16 = vsyncpa [#allocation3], 0  ;;  %s3691_s0 = inlined_call_operand.hbm [shape: f32[64,128], index: 0, kind: input, shape index: {}]   ;;  %s3692_s1 = inlined_call_operand.hbm [shape: f32[128,8], index: 1, kind: input, shape index: {}]   ;;  %s3693_s2 = inlined_call_operand.hbm [shape: f32[8,128], index: 2, kind: input, shape index: {}]   ;;  %s3694_s3 = inlined_call_operand.hbm [shape: bf16[64,64], index: 3, kind: input, shape index: {}]   ;;  %s3695_s4 = inlined_call_operand.hbm [shape: f32[64,1], index: 4, kind: input, shape index: {}]   ;;  %s3696_s5 = inlined_call_operand.hbm [shape: f32[64,1], index: 5, kind: input, shape index: {}]   ;;  %s3697_s6 = inlined_call_operand.hbm [shape: bf16[192,64], index: 6, kind: input, shape index: {}]   ;;  %s3698_s7 = inlined_call_operand.hbm [shape: f32[192,1], index: 7, kind: input, shape index: {}]   ;;  %s3699_s8 = inlined_call_operand.hbm [shape: bf16[64,64], index: 8, kind: input, shape index: {}]   ;;  %s3700_s9 = inlined_call_operand.hbm [shape: f32[64,1], index: 9, kind: input, shape index: {}]   ;;  %s3701_s10 = inlined_call_operand.hbm [shape: f32[128,128], index: 10, kind: input, shape index: {}]   ;;  %s3702_s11 = inlined_call_operand.hbm [shape: f32[64,128], index: 11, kind: output, shape index: {}]  }
   0x1   :  { %17 = vsyncpa [#allocation6], 0 }
   0x2   :  { %18 = vsyncpa [#allocation9], 0 }
   0x3   :  { %19 = vsyncpa [#allocation12], 0 }
   0x4   :  { %20 = vsyncpa [#allocation15], 0 }
   0x5   :  { %21 = vsyncpa [#allocation18], 0 }
   0x6   :  { %22 = vsyncpa [#allocation4], 0  ;;  %s3076_s17 = smov [#allocation5]   ;;  %s3077_s19 = smov [#allocation8]  }
   0x7   :  { %s40_s18 = sshll.u32 %s3076_s17, 4  ;;  %s62_s20 = sshll.u32 %s3077_s19, 4  ;;  %s41_s18 = int_to_ptr.vmem [resolvable:$true] %s40_s18  ;;  %s3153_s20 = int_to_ptr.vmem [resolvable:$true] %s62_s20 }
   0x8   :  { %s2798_s23 = scalar_lea.hbm %s3692_s1, 2048 }
   0x9   :  { %p2799_p0 = scmp.ne.s32.totalorder %s3692_s1, %s2798_s23  ;;  %p2802_p1 = scmp.lt.u32.totalorder %s2798_s23, %s3692_s1 }
   0xb   :  { %p2804_p2 = pnand %p2802_p1, %p2799_p0 }
   0xd   :  { %2807 = shalt.err (!%p2804_p2)
}
   0xe   :  { %s2808_s28 = scalar_lea.vmem %s41_s18, 2048  ;;  %p2813_p4 = scmp.lt.s32.totalorder %s41_s18, %s41_s18 }
   0xf   :  { %p2809_p3 = scmp.ne.s32.totalorder %s41_s18, %s2808_s28  ;;  %p2814_p5 = scmp.lt.s32.totalorder %s2808_s28, %s2808_s28 }
  0x11   :  { %p2815_p6 = por %p2814_p5, %p2813_p4 }
  0x13   :  { %p2816_p7 = pnand %p2815_p6, %p2809_p3 }
  0x15   :  { %2819 = shalt.err (!%p2816_p7)
}
  0x16   :  { %s3078_s29 = smov 128   ;;  %s3079_s30 = smov 8  }
  0x17   :  { %46 = dma.hbm_to_vmem [thread:$0]  %s3692_s1, 2048, %s41_s18, [#allocation6], %s3078_s29, %s3078_s29, %s3079_s30  }
  0x18   :  { %s2820_s16 = scalar_lea.hbm %s3694_s3, 512 }
  0x19   :  { %p2821_p8 = scmp.ne.s32.totalorder %s3694_s3, %s2820_s16  ;;  %p2824_p9 = scmp.lt.u32.totalorder %s2820_s16, %s3694_s3 }
  0x1b   :  { %p2826_p10 = pnand %p2824_p9, %p2821_p8 }
  0x1d   :  { %2829 = shalt.err (!%p2826_p10)
}
  0x1e   :  { %s2830_s23 = scalar_lea.vmem %s3153_s20, 512  ;;  %p2835_p12 = scmp.lt.s32.totalorder %s3153_s20, %s3153_s20 }
  0x1f   :  { %p2831_p11 = scmp.ne.s32.totalorder %s3153_s20, %s2830_s23  ;;  %p2836_p13 = scmp.lt.s32.totalorder %s2830_s23, %s2830_s23 }
  0x21   :  { %p2837_p0 = por %p2836_p13, %p2835_p12 }
  0x23   :  { %p2838_p1 = pnand %p2837_p0, %p2831_p11 }
  0x25   :  { %2841 = shalt.err (!%p2838_p1)
}
  0x26   :  { %s3080_s1 = smov 64   ;;  %s3081_s18 = smov 4  }
  0x27   :  { %68 = dma.hbm_to_vmem [thread:$0]  %s3694_s3, 512, %s3153_s20, [#allocation9], %s3080_s1, %s3080_s1, %s3081_s18  }
  0x28   :  { %s3082_s26 = smov [#allocation11]   ;;  %s3083_s28 = smov [#allocation14]  }
  0x29   :  { %s86_s27 = sshll.u32 %s3082_s26, 4  ;;  %s110_s12 = sshll.u32 %s3083_s28, 4  ;;  %s87_s27 = int_to_ptr.vmem [resolvable:$true] %s86_s27  ;;  %s3190_s12 = int_to_ptr.vmem [resolvable:$true] %s110_s12 }
  0x2a   :  { %s2842_s15 = scalar_lea.hbm %s3696_s5, 1024 }
  0x2b   :  { %p2843_p2 = scmp.ne.s32.totalorder %s3696_s5, %s2842_s15  ;;  %p2846_p3 = scmp.lt.u32.totalorder %s2842_s15, %s3696_s5 }
  0x2d   :  { %p2848_p4 = pnand %p2846_p3, %p2843_p2 }
  0x2f   :  { %2851 = shalt.err (!%p2848_p4)
}
  0x30   :  { %s2852_s3 = scalar_lea.vmem %s87_s27, 1024  ;;  %p2857_p6 = scmp.lt.s32.totalorder %s87_s27, %s87_s27 }
  0x31   :  { %p2853_p5 = scmp.ne.s32.totalorder %s87_s27, %s2852_s3  ;;  %p2858_p7 = scmp.lt.s32.totalorder %s2852_s3, %s2852_s3 }
  0x33   :  { %p2859_p8 = por %p2858_p7, %p2857_p6 }
  0x35   :  { %p2860_p9 = pnand %p2859_p8, %p2853_p5 }
  0x37   :  { %2863 = shalt.err (!%p2860_p9)
}
  0x38   :  { %92 = dma.hbm_to_vmem [thread:$0]  %s3696_s5, 1024, %s87_s27, [#allocation12], %s3078_s29, %s3078_s29, %s3079_s30  }
  0x39   :  { %s2864_s25 = scalar_lea.hbm %s3698_s7, 3072 }
  0x3a   :  { %p2865_p10 = scmp.ne.s32.totalorder %s3698_s7, %s2864_s25  ;;  %p2868_p11 = scmp.lt.u32.totalorder %s2864_s25, %s3698_s7 }
  0x3c   :  { %p2870_p12 = pnand %p2868_p11, %p2865_p10 }
  0x3e   :  { %2873 = shalt.err (!%p2870_p12)
}
  0x3f   :  { %s2874_s15 = scalar_lea.vmem %s3190_s12, 3072  ;;  %p2879_p0 = scmp.lt.s32.totalorder %s3190_s12, %s3190_s12 }
  0x40   :  { %p2875_p13 = scmp.ne.s32.totalorder %s3190_s12, %s2874_s15  ;;  %p2880_p1 = scmp.lt.s32.totalorder %s2874_s15, %s2874_s15 }
  0x42   :  { %p2881_p2 = por %p2880_p1, %p2879_p0 }
  0x44   :  { %p2882_p3 = pnand %p2881_p2, %p2875_p13 }
  0x46   :  { %2885 = shalt.err (!%p2882_p3)
}
  0x47   :  { %116 = dma.hbm_to_vmem [thread:$0]  %s3698_s7, 3072, %s3190_s12, [#allocation15], %s3078_s29, %s3078_s29, %s3079_s30  }
  0x48   :  { %s3084_s16 = smov [#allocation17]   ;;  %s3085_s19 = smov [#allocation2]  }
  0x49   :  { %s134_s17 = sshll.u32 %s3084_s16, 4  ;;  %s28_s21 = sshll.u32 %s3085_s19, 4  ;;  %s135_s17 = int_to_ptr.vmem [resolvable:$true] %s134_s17  ;;  %s3227_s21 = int_to_ptr.vmem [resolvable:$true] %s28_s21 }
  0x4a   :  { %s2886_s22 = scalar_lea.hbm %s3700_s9, 1024 }
  0x4b   :  { %p2887_p4 = scmp.ne.s32.totalorder %s3700_s9, %s2886_s22  ;;  %p2890_p5 = scmp.lt.u32.totalorder %s2886_s22, %s3700_s9 }
  0x4d   :  { %p2892_p6 = pnand %p2890_p5, %p2887_p4 }
  0x4f   :  { %2895 = shalt.err (!%p2892_p6)
}
  0x50   :  { %s2896_s7 = scalar_lea.vmem %s135_s17, 1024  ;;  %p2901_p8 = scmp.lt.s32.totalorder %s135_s17, %s135_s17 }
  0x51   :  { %p2897_p7 = scmp.ne.s32.totalorder %s135_s17, %s2896_s7  ;;  %p2902_p9 = scmp.lt.s32.totalorder %s2896_s7, %s2896_s7 }
  0x53   :  { %p2903_p10 = por %p2902_p9, %p2901_p8 }
  0x55   :  { %p2904_p11 = pnand %p2903_p10, %p2897_p7 }
  0x57   :  { %2907 = shalt.err (!%p2904_p11)
}
  0x58   :  { %140 = dma.hbm_to_vmem [thread:$0]  %s3700_s9, 1024, %s135_s17, [#allocation18], %s3078_s29, %s3078_s29, %s3079_s30  }
  0x59   :  { %s2908_s15 = scalar_lea.hbm %s3691_s0, 1024 }
  0x5a   :  { %p2909_p12 = scmp.ne.s32.totalorder %s3691_s0, %s2908_s15  ;;  %p2912_p13 = scmp.lt.u32.totalorder %s2908_s15, %s3691_s0 }
  0x5c   :  { %p2914_p0 = pnand %p2912_p13, %p2909_p12 }
  0x5e   :  { %2917 = shalt.err (!%p2914_p0)
}
  0x5f   :  { %s2918_s3 = scalar_lea.vmem %s3227_s21, 1024  ;;  %p2923_p2 = scmp.lt.s32.totalorder %s3227_s21, %s3227_s21 }
  0x60   :  { %p2919_p1 = scmp.ne.s32.totalorder %s3227_s21, %s2918_s3  ;;  %p2924_p3 = scmp.lt.s32.totalorder %s2918_s3, %s2918_s3 }
  0x62   :  { %p2925_p4 = por %p2924_p3, %p2923_p2 }
  0x64   :  { %p2926_p5 = pnand %p2925_p4, %p2919_p1 }
  0x66   :  { %2929 = shalt.err (!%p2926_p5)
}
  0x67   :  { %34 = dma.hbm_to_vmem [thread:$0]  %s3691_s0, 1024, %s3227_s21, [#allocation3], %s3078_s29, %s3078_s29, %s3079_s30  }
  0x68   :  { %s3086_s20 = smov [#allocation7]   ;;  %s3087_s23 = smov [#allocation10]  }
  0x69   :  { %s53_s22 = sshll.u32 %s3086_s20, 4  ;;  %s74_s24 = sshll.u32 %s3087_s23, 4  ;;  %s54_s22 = int_to_ptr.vmem [resolvable:$true] %s53_s22  ;;  %s3264_s24 = int_to_ptr.vmem [resolvable:$true] %s74_s24 }
  0x6a   :  { %s2930_s7 = scalar_lea.hbm %s3693_s2, 128 }
  0x6b   :  { %p2931_p6 = scmp.ne.s32.totalorder %s3693_s2, %s2930_s7  ;;  %p2934_p7 = scmp.lt.u32.totalorder %s2930_s7, %s3693_s2 }
  0x6d   :  { %p2936_p8 = pnand %p2934_p7, %p2931_p6 }
  0x6f   :  { %2939 = shalt.err (!%p2936_p8)
}
  0x70   :  { %s2940_s0 = scalar_lea.vmem %s54_s22, 128  ;;  %p2945_p10 = scmp.lt.s32.totalorder %s54_s22, %s54_s22 }
  0x71   :  { %p2941_p9 = scmp.ne.s32.totalorder %s54_s22, %s2940_s0  ;;  %p2946_p11 = scmp.lt.s32.totalorder %s2940_s0, %s2940_s0 }
  0x73   :  { %p2947_p12 = por %p2946_p11, %p2945_p10 }
  0x75   :  { %p2948_p13 = pnand %p2947_p12, %p2941_p9 }
  0x77   :  { %2951 = shalt.err (!%p2948_p13)
}
  0x78   :  { %56 = dma.hbm_to_vmem [thread:$0]  %s3693_s2, 128, %s54_s22, [#allocation6]  }
  0x79   :  { %s2952_s16 = scalar_lea.hbm %s3695_s4, 1024 }
  0x7a   :  { %p2953_p0 = scmp.ne.s32.totalorder %s3695_s4, %s2952_s16  ;;  %p2956_p1 = scmp.lt.u32.totalorder %s2952_s16, %s3695_s4 }
  0x7c   :  { %p2958_p2 = pnand %p2956_p1, %p2953_p0 }
  0x7e   :  { %2961 = shalt.err (!%p2958_p2)
}
  0x7f   :  { %s2962_s20 = scalar_lea.vmem %s3264_s24, 1024  ;;  %p2967_p4 = scmp.lt.s32.totalorder %s3264_s24, %s3264_s24 }
  0x80   :  { %p2963_p3 = scmp.ne.s32.totalorder %s3264_s24, %s2962_s20  ;;  %p2968_p5 = scmp.lt.s32.totalorder %s2962_s20, %s2962_s20 }
  0x82   :  { %p2969_p6 = por %p2968_p5, %p2967_p4 }
  0x84   :  { %p2970_p7 = pnand %p2969_p6, %p2963_p3 }
  0x86   :  { %2973 = shalt.err (!%p2970_p7)
}
  0x87   :  { %80 = dma.hbm_to_vmem [thread:$0]  %s3695_s4, 1024, %s3264_s24, [#allocation9], %s3078_s29, %s3078_s29, %s3079_s30  }
  0x88   :  { %s3088_s23 = smov [#allocation13]   ;;  %s3089_s26 = smov [#allocation16]  }
  0x89   :  { %s98_s25 = sshll.u32 %s3088_s23, 4  ;;  %s122_s7 = sshll.u32 %s3089_s26, 4  ;;  %s99_s25 = int_to_ptr.vmem [resolvable:$true] %s98_s25  ;;  %s3298_s7 = int_to_ptr.vmem [resolvable:$true] %s122_s7 }
  0x8a   :  { %s2974_s13 = scalar_lea.hbm %s3697_s6, 1536 }
  0x8b   :  { %p2975_p8 = scmp.ne.s32.totalorder %s3697_s6, %s2974_s13  ;;  %p2978_p9 = scmp.lt.u32.totalorder %s2974_s13, %s3697_s6 }
  0x8d   :  { %p2980_p10 = pnand %p2978_p9, %p2975_p8 }
  0x8f   :  { %2983 = shalt.err (!%p2980_p10)
}
  0x90   :  { %s2984_s4 = scalar_lea.vmem %s99_s25, 1536  ;;  %p2989_p12 = scmp.lt.s32.totalorder %s99_s25, %s99_s25 }
  0x91   :  { %p2985_p11 = scmp.ne.s32.totalorder %s99_s25, %s2984_s4  ;;  %p2990_p13 = scmp.lt.s32.totalorder %s2984_s4, %s2984_s4 }
  0x93   :  { %p2991_p0 = por %p2990_p13, %p2989_p12 }
  0x95   :  { %p2992_p1 = pnand %p2991_p0, %p2985_p11 }
  0x97   :  { %2995 = shalt.err (!%p2992_p1)
}
  0x98   :  { %104 = dma.hbm_to_vmem [thread:$0]  %s3697_s6, 1536, %s99_s25, [#allocation12], %s3080_s1, %s3080_s1, %s3081_s18  }
  0x99   :  { %s2996_s19 = scalar_lea.hbm %s3699_s8, 512 }
  0x9a   :  { %p2997_p2 = scmp.ne.s32.totalorder %s3699_s8, %s2996_s19  ;;  %p3000_p3 = scmp.lt.u32.totalorder %s2996_s19, %s3699_s8 }
  0x9c   :  { %p3002_p4 = pnand %p3000_p3, %p2997_p2 }
  0x9e   :  { %3005 = shalt.err (!%p3002_p4)
}
  0x9f   :  { %s3006_s2 = scalar_lea.vmem %s3298_s7, 512  ;;  %p3011_p6 = scmp.lt.s32.totalorder %s3298_s7, %s3298_s7 }
  0xa0   :  { %p3007_p5 = scmp.ne.s32.totalorder %s3298_s7, %s3006_s2  ;;  %p3012_p7 = scmp.lt.s32.totalorder %s3006_s2, %s3006_s2 }
  0xa2   :  { %p3013_p8 = por %p3012_p7, %p3011_p6 }
  0xa4   :  { %p3014_p9 = pnand %p3013_p8, %p3007_p5 }
  0xa6   :  { %3017 = shalt.err (!%p3014_p9)
}
  0xa7   :  { %128 = dma.hbm_to_vmem [thread:$0]  %s3699_s8, 512, %s3298_s7, [#allocation15], %s3080_s1, %s3080_s1, %s3081_s18  }
  0xa8   :  { %s3090_s23 = smov [#allocation19]   ;;  %s3018_s28 = scalar_lea.hbm %s3701_s10, 2048 }
  0xa9   :  { %s146_s25 = sshll.u32 %s3090_s23, 4  ;;  %p3019_p10 = scmp.ne.s32.totalorder %s3701_s10, %s3018_s28  ;;  %s147_s25 = int_to_ptr.vmem [resolvable:$true] %s146_s25 }
  0xaa   :  { %p3022_p11 = scmp.lt.u32.totalorder %s3018_s28, %s3701_s10 }
  0xac   :  { %p3024_p12 = pnand %p3022_p11, %p3019_p10 }
  0xae   :  { %3027 = shalt.err (!%p3024_p12)
}
  0xaf   :  { %s3028_s15 = scalar_lea.vmem %s147_s25, 2048  ;;  %p3033_p0 = scmp.lt.s32.totalorder %s147_s25, %s147_s25 }
  0xb0   :  { %p3029_p13 = scmp.ne.s32.totalorder %s147_s25, %s3028_s15  ;;  %p3034_p1 = scmp.lt.s32.totalorder %s3028_s15, %s3028_s15 }
  0xb2   :  { %p3035_p2 = por %p3034_p1, %p3033_p0 }
  0xb4   :  { %p3036_p3 = pnand %p3035_p2, %p3029_p13 }
  0xb6   :  { %3039 = shalt.err (!%p3036_p3)
}
  0xb7   :  { %152 = dma.hbm_to_vmem [thread:$0]  %s3701_s10, 2048, %s147_s25, [#allocation18], %s3078_s29, %s3078_s29, %s3079_s30  }
  0xb8   :  { %3062 = dma.done.wait [#allocation3], 1024  }
  0xb9   :  { %3063 = vsyncadd [#allocation3], 4294966272 }
  0xba   :  { %3064 = dma.done.wait [#allocation6], 2176  }
  0xbb   :  { %3065 = vsyncadd [#allocation6], 4294965120 }
  0xbc   :  { %3066 = dma.done.wait [#allocation9], 1536  }
  0xbd   :  { %3067 = vsyncadd [#allocation9], 4294965760 }
  0xbe   :  { %3068 = dma.done.wait [#allocation12], 2560  }
  0xbf   :  { %3069 = vsyncadd [#allocation12], 4294964736 }
  0xc0   :  { %3070 = dma.done.wait [#allocation15], 3584  }
  0xc1   :  { %3071 = vsyncadd [#allocation15], 4294963712 }
  0xc2   :  { %3072 = dma.done.wait [#allocation18], 3072  }
  0xc3   :  { %3073 = vsyncadd [#allocation18], 4294964224  ;;  %v195_v0 = vld [vmem:[#allocation5] sm:$0xff]  ;;  %v196_v1 = vld [vmem:[#allocation5 + $0x8] sm:$0xff]  ;;  %vm413_vm0 = vcmask 523264   ;;  %vm551_vm1 = vcmask 64512  }
  0xc4   :  { %v197_v2 = vld [vmem:[#allocation5 + $0x10] sm:$0xff]  ;;  %v2579_v3 = vpack.c.bf16 %v196_v1, %v195_v0  ;;  %v198_v4 = vld [vmem:[#allocation5 + $0x18] sm:$0xff]  ;;  %v199_v6 = vld [vmem:[#allocation5 + $0x20] sm:$0xff]  ;;  %s3092_s10 = smov [#allocation20]  }
  0xc5   :  { %v2583_v5 = vpack.c.bf16 %v198_v4, %v197_v2  ;;  %v200_v7 = vld [vmem:[#allocation5 + $0x28] sm:$0xff]  ;;  %v3350_v9 = vld [vmem:[#allocation2] sm:$0xff]  ;;  %v201_v10 = vld [vmem:[#allocation5 + $0x30] sm:$0xff]  ;;  %s2057_s18 = sshll.u32 %s3092_s10, 4  ;;  %s2058_s18 = int_to_ptr.vmem [resolvable:$true] %s2057_s18 }
  0xc6   :  { %2580 = vmatprep.subr.bf16.mxu0 %v2579_v3  ;;  %v2587_v8 = vpack.c.bf16 %v200_v7, %v199_v6  ;;  %v202_v11 = vld [vmem:[#allocation5 + $0x38] sm:$0xff]  ;;  %2343 = vmatprep.mubr.f32.mxu0 %v3350_v9  ;;  %v203_v12 = vld [vmem:[#allocation5 + $0x40] sm:$0xff]  ;;  %v204_v13 = vld [vmem:[#allocation5 + $0x48] sm:$0xff]  ;;  %s3040_s7 = scalar_lea.vmem %s2058_s18, 1024  ;;  %p3045_p5 = scmp.lt.s32.totalorder %s2058_s18, %s2058_s18 }
  0xc7   :  { %2582 = vmatpush3.bf16.msra.mxu0 %v2579_v3  ;;  %v2591_v14 = vpack.c.bf16 %v202_v11, %v201_v10  ;;  %v205_v15 = vld [vmem:[#allocation5 + $0x50] sm:$0xff]  ;;  %v206_v16 = vld [vmem:[#allocation5 + $0x58] sm:$0xff]  ;;  %v2595_v17 = vpack.c.bf16 %v204_v13, %v203_v12  ;;  %v207_v18 = vld [vmem:[#allocation5 + $0x60] sm:$0xff]  ;;  %p3041_p4 = scmp.ne.s32.totalorder %s2058_s18, %s3040_s7  ;;  %p3046_p6 = scmp.lt.s32.totalorder %s3040_s7, %s3040_s7 }
  0xc8   :  { %2584 = vmatprep.subr.bf16.mxu0 %v2583_v5  ;;  %v2599_v19 = vpack.c.bf16 %v206_v16, %v205_v15  ;;  %v208_v20 = vld [vmem:[#allocation5 + $0x68] sm:$0xff]  ;;  %v209_v22 = vld [vmem:[#allocation5 + $0x70] sm:$0xff]  ;;  %v210_v23 = vld [vmem:[#allocation5 + $0x78] sm:$0xff] }
  0xc9   :  { %v2603_v21 = vpack.c.bf16 %v208_v20, %v207_v18  ;;  %v2607_v24 = vpack.c.bf16 %v210_v23, %v209_v22  ;;  %v3353_v25 = vld [vmem:[#allocation2 + $0x8] sm:$0xff]  ;;  %v3355_v26 = vld [vmem:[#allocation2 + $0x10] sm:$0xff]  ;;  %v3359_v27 = vld [vmem:[#allocation2 + $0x18] sm:$0xff]  ;;  %p3047_p7 = por %p3046_p6, %p3045_p5 }
  0xca   :  { %v3361_v28 = vld [vmem:[#allocation2 + $0x20] sm:$0xff]  ;;  %v3365_v29 = vld [vmem:[#allocation2 + $0x28] sm:$0xff]  ;;  %v3367_v30 = vld [vmem:[#allocation2 + $0x30] sm:$0xff] }
  0xcb   :  { %2586 = vmatpush3.bf16.msra.mxu0 %v2583_v5  ;;  %v3371_v31 = vld [vmem:[#allocation2 + $0x38] sm:$0xff]  ;;  %v3374_v32 = vld [vmem:[#allocation8] sm:$0xff]   ;;  %v3380_v46 = vld [vmem:[#allocation8 + $0x8] sm:$0xff]   ;;  %p3048_p8 = pnand %p3047_p7, %p3041_p4 }
  0xcc   :  { %2588 = vmatprep.subr.bf16.mxu0 %v2587_v8  ;;  %v2148_v33 = vunpack.c.l.bf16 %v3374_v32  ;;  %v2149_v47 = vunpack.c.h.bf16 %v3374_v32  ;;  %v2152_v48 = vunpack.c.l.bf16 %v3380_v46  ;;  %v3384_v49 = vld [vmem:[#allocation8 + $0x10] sm:$0xff]   ;;  %v2153_v50 = vunpack.c.h.bf16 %v3380_v46  ;;  %v3394_v52 = vld [vmem:[#allocation8 + $0x18] sm:$0xff]  }
  0xcd   :  { %v2156_v51 = vunpack.c.l.bf16 %v3384_v49  ;;  %v2157_v53 = vunpack.c.h.bf16 %v3384_v49  ;;  %v2160_v54 = vunpack.c.l.bf16 %v3394_v52  ;;  %v2161_v55 = vunpack.c.h.bf16 %v3394_v52  ;;  %v3414_v56 = vld [vmem:[#allocation7] sm:$0xff] }
  0xce   :  { %2371 = vmatprep.mubr.msk.f32.mxu1 %vm413_vm0, %v2148_v33 }
  0xcf   :  { %2590 = vmatpush3.bf16.msra.mxu0 %v2587_v8 }
  0xd0   :  { %2592 = vmatprep.subr.bf16.mxu0 %v2591_v14 }
  0xd3   :  { %2594 = vmatpush3.bf16.msra.mxu0 %v2591_v14 }
  0xd4   :  { %2596 = vmatprep.subr.bf16.mxu0 %v2595_v17 }
  0xd7   :  { %2598 = vmatpush3.bf16.msra.mxu0 %v2595_v17 }
  0xd8   :  { %2600 = vmatprep.subr.bf16.mxu0 %v2599_v19 }
  0xdb   :  { %2602 = vmatpush3.bf16.msra.mxu0 %v2599_v19 }
  0xdc   :  { %2604 = vmatprep.subr.bf16.mxu0 %v2603_v21 }
  0xdf   :  { %2606 = vmatpush3.bf16.msra.mxu0 %v2603_v21 }
  0xe0   :  { %2608 = vmatprep.subr.bf16.mxu0 %v2607_v24 }
  0xe3   :  { %2610 = vmatpush3.bf16.msra.mxu0 %v2607_v24 }
  0xe4   :  { %2628 = vmatprep.subr.bf16.mxu0 %v2579_v3 }
  0xe6   :  { %2344 = vmatmul.mubr.f32.vlgmr.msra.gmra.mrb[0].mxu0 %v3353_v25 }
  0xe7   :  { %2346 = vmatprep.mubr.f32.mxu0 %v3355_v26  ;;  %2630 = vmatpush3.bf16.msra.mxu0 %v2579_v3 }
  0xe8   :  { %2632 = vmatprep.subr.bf16.mxu0 %v2583_v5 }
  0xea   :  { %2347 = vmatmul.mubr.f32.gmra.mrb[2].mxu0 %v3359_v27 }
  0xeb   :  { %2349 = vmatprep.mubr.f32.mxu0 %v3361_v28  ;;  %2634 = vmatpush3.bf16.msra.mxu0 %v2583_v5 }
  0xec   :  { %2636 = vmatprep.subr.bf16.mxu0 %v2587_v8 }
  0xee   :  { %2350 = vmatmul.mubr.f32.gmra.mrb[4].mxu0 %v3365_v29 }
  0xef   :  { %2352 = vmatprep.mubr.f32.mxu0 %v3367_v30  ;;  %2638 = vmatpush3.bf16.msra.mxu0 %v2587_v8 }
  0xf0   :  { %2640 = vmatprep.subr.bf16.mxu0 %v2591_v14 }
  0xf2   :  { %2353 = vmatmul.mubr.f32.gmra.mrb[6].mxu0 %v3371_v31 }
  0xf3   :  { %2642 = vmatpush3.bf16.msra.mxu0 %v2591_v14 }
  0xf4   :  { %2644 = vmatprep.subr.bf16.mxu0 %v2595_v17 }
  0xf7   :  { %2646 = vmatpush3.bf16.msra.mxu0 %v2595_v17 }
  0xf8   :  { %2648 = vmatprep.subr.bf16.mxu0 %v2599_v19 }
  0xfb   :  { %2650 = vmatpush3.bf16.msra.mxu0 %v2599_v19 }
  0xfc   :  { %2652 = vmatprep.subr.bf16.mxu0 %v2603_v21 }
  0xff   :  { %2654 = vmatpush3.bf16.msra.mxu0 %v2603_v21 }
 0x100   :  { %2656 = vmatprep.subr.bf16.mxu0 %v2607_v24 }
 0x103   :  { %2658 = vmatpush3.bf16.msra.mxu0 %v2607_v24 }
 0x1b9   :  { %v2345_v34 = vpop.f32.mrb[0].mxu0 }
 0x1ba   :  { %v374_v35 = vpop.f32.mrb[1].mxu0 }
 0x1bb   :  { %v2611_v36 = vpack.c.bf16 %v2345_v34, %v374_v35 }
 0x1bd   :  { %v2348_v37 = vpop.f32.mrb[2].mxu0  ;;  %2612 = vmatprep.subr.bf16.mxu1 %v2611_v36 }
 0x1be   :  { %v384_v38 = vpop.f32.mrb[3].mxu0  ;;  %2614 = vmatpush3.bf16.msra.mxu1 %v2611_v36  ;;  %v228_v36 = vld [vmem:[#allocation10] sm:$0xff] }
 0x1bf   :  { %v2615_v39 = vpack.c.bf16 %v2348_v37, %v384_v38  ;;  %v230_v37 = vld [vmem:[#allocation10 + $0x10] sm:$0xff]  ;;  %v3091_v38 = vmov 0  }
 0x1c0   :  { %2692 = vset.pattern.permute.xlu0 %v3091_v38  ;;  %2693 = vset.pattern.permute.xlu1 %v3091_v38 }
 0x1c1   :  { %v2351_v40 = vpop.f32.mrb[4].mxu0  ;;  %2616 = vmatprep.subr.bf16.mxu1 %v2615_v39  ;;  %933 = vperm.xlu0 %2692, %v228_v36  }
 0x1c2   :  { %v394_v41 = vpop.f32.mrb[5].mxu0  ;;  %2618 = vmatpush3.bf16.msra.mxu1 %v2615_v39  ;;  %943 = vperm.xlu1 %2693, %v230_v37   ;;  %v232_v39 = vld [vmem:[#allocation10 + $0x20] sm:$0xff] }
 0x1c3   :  { %v2619_v42 = vpack.c.bf16 %v2351_v40, %v394_v41  ;;  %v233_v40 = vld [vmem:[#allocation10 + $0x28] sm:$0xff]  ;;  %v234_v41 = vld [vmem:[#allocation10 + $0x30] sm:$0xff] }
 0x1c5   :  { %v2354_v43 = vpop.f32.mrb[6].mxu0  ;;  %2620 = vmatprep.subr.bf16.mxu1 %v2619_v42 }
 0x1c6   :  { %v404_v44 = vpop.f32.mrb[7].mxu0  ;;  %2622 = vmatpush3.bf16.msra.mxu1 %v2619_v42  ;;  %v235_v42 = vld [vmem:[#allocation10 + $0x38] sm:$0xff] }
 0x1c7   :  { %v2623_v45 = vpack.c.bf16 %v2354_v43, %v404_v44  ;;  %v236_v43 = vld [vmem:[#allocation11] sm:$0xff]  ;;  %v237_v44 = vld [vmem:[#allocation11 + $0x8] sm:$0xff] }
 0x1c9   :  { %2624 = vmatprep.subr.bf16.mxu1 %v2623_v45 }
 0x1ca   :  { %2626 = vmatpush3.bf16.msra.mxu1 %v2623_v45  ;;  %v238_v45 = vld [vmem:[#allocation11 + $0x10] sm:$0xff] }
 0x1cb   :  { %2383 = vmatprep.subr.mxu1 %v3414_v56 }
 0x1cd   :  { %2372 = vmatmul.mubr.msk.f32.vlgmr.msra.gmra.mrb[0].mxu1 %vm413_vm0, %v2149_v47 }
 0x1ce   :  { %2374 = vmatprep.mubr.msk.f32.mxu1 %vm413_vm0, %v2152_v48  ;;  %2384 = vmatpush3.msra.mxu1 %v3414_v56 }
 0x1d1   :  { %2375 = vmatmul.mubr.msk.f32.gmra.mrb[2].mxu1 %vm413_vm0, %v2153_v50 }
 0x1d2   :  { %2377 = vmatprep.mubr.msk.f32.mxu1 %vm413_vm0, %v2156_v51 }
 0x1d5   :  { %2378 = vmatmul.mubr.msk.f32.gmra.mrb[4].mxu1 %vm413_vm0, %v2157_v53 }
 0x1d6   :  { %2380 = vmatprep.mubr.msk.f32.mxu1 %vm413_vm0, %v2160_v54 }
 0x1d9   :  { %2381 = vmatmul.mubr.msk.f32.gmra.mrb[6].mxu1 %vm413_vm0, %v2161_v55 }
 0x2a0   :  { %v2373_v57 = vpop.f32.mrb[0].mxu1 }
 0x2a1   :  { %v504_v58 = vpop.f32.mrb[1].mxu1  ;;  %v544_v60 = vmul.f32 0.03125, %v2373_v57  ;;  %v239_v57 = vld [vmem:[#allocation11 + $0x18] sm:$0xff] }
 0x2a2   :  { %v543_v59 = vmul.f32 0.03125, %v504_v58  ;;  %v240_v58 = vld [vmem:[#allocation11 + $0x20] sm:$0xff] }
 0x2a4   :  { %v2376_v61 = vpop.f32.mrb[2].mxu1  ;;  %2385 = vmatprep.mubr.msk.f32.mxu1 %vm551_vm1, %v543_v59  ;;  %v241_v59 = vld [vmem:[#allocation11 + $0x28] sm:$0xff] }
 0x2a5   :  { %v514_v62 = vpop.f32.mrb[3].mxu1  ;;  %2386 = vmatmul.mubr.msk.f32.vlgmr.msra.gmra.mrb[8].mxu1 %vm551_vm1, %v544_v60  ;;  %v546_v0 = vmul.f32 0.03125, %v2376_v61  ;;  %v242_v60 = vld [vmem:[#allocation11 + $0x30] sm:$0xff]  ;;  %v243_v61 = vld [vmem:[#allocation11 + $0x38] sm:$0xff] }
 0x2a6   :  { %v545_v63 = vmul.f32 0.03125, %v514_v62  ;;  %v268_v62 = vld [vmem:[#allocation14] sm:$0xff] }
 0x2a8   :  { %v2379_v1 = vpop.f32.mrb[4].mxu1  ;;  %2388 = vmatprep.mubr.msk.f32.mxu1 %vm551_vm1, %v545_v63  ;;  %v269_v63 = vld [vmem:[#allocation14 + $0x8] sm:$0xff] }
 0x2a9   :  { %v524_v2 = vpop.f32.mrb[5].mxu1  ;;  %2389 = vmatmul.mubr.msk.f32.gmra.mrb[10].mxu1 %vm551_vm1, %v546_v0  ;;  %v548_v4 = vmul.f32 0.03125, %v2379_v1  ;;  %v270_v0 = vld [vmem:[#allocation14 + $0x10] sm:$0xff]  ;;  %v271_v1 = vld [vmem:[#allocation14 + $0x18] sm:$0xff] }
 0x2aa   :  { %v547_v3 = vmul.f32 0.03125, %v524_v2  ;;  %v272_v2 = vld [vmem:[#allocation14 + $0x20] sm:$0xff] }
 0x2ac   :  { %v2382_v5 = vpop.f32.mrb[6].mxu1  ;;  %2391 = vmatprep.mubr.msk.f32.mxu1 %vm551_vm1, %v547_v3  ;;  %v273_v3 = vld [vmem:[#allocation14 + $0x28] sm:$0xff] }
 0x2ad   :  { %v534_v6 = vpop.f32.mrb[7].mxu1  ;;  %2392 = vmatmul.mubr.msk.f32.gmra.mrb[12].mxu1 %vm551_vm1, %v548_v4  ;;  %v550_v8 = vmul.f32 0.03125, %v2382_v5  ;;  %v274_v4 = vld [vmem:[#allocation14 + $0x30] sm:$0xff]  ;;  %v275_v5 = vld [vmem:[#allocation14 + $0x38] sm:$0xff] }
 0x2ae   :  { %v549_v7 = vmul.f32 0.03125, %v534_v6  ;;  %v276_v6 = vld [vmem:[#allocation14 + $0x40] sm:$0xff] }
 0x2b0   :  { %2394 = vmatprep.mubr.msk.f32.mxu1 %vm551_vm1, %v549_v7  ;;  %v277_v7 = vld [vmem:[#allocation14 + $0x48] sm:$0xff] }
 0x2b1   :  { %2395 = vmatmul.mubr.msk.f32.gmra.mrb[14].mxu1 %vm551_vm1, %v550_v8  ;;  %v278_v8 = vld [vmem:[#allocation14 + $0x50] sm:$0xff] }
 0x2b2   :  { %2457 = vmatprep.mubr.msk.f32.mxu1 %vm413_vm0, %v2148_v33 }
 0x378   :  { %v2387_v10 = vpop.f32.mrb[8].mxu1 }
 0x379   :  { %v3430_v11 = vsub.f32 %v3353_v25, %v2387_v10  ;;  %v642_v12 = vpop.f32.mrb[9].mxu1  ;;  %v279_v10 = vld [vmem:[#allocation14 + $0x58] sm:$0xff] }
 0x37a   :  { %v3433_v13 = vsub.f32 %v3350_v9, %v642_v12  ;;  %v280_v12 = vld [vmem:[#allocation14 + $0x60] sm:$0xff] }
 0x37b   :  { %v690_v16 = vmul.f32 %v3430_v11, %v3430_v11 }
 0x37c   :  { %v689_v14 = vmul.f32 %v3433_v13, %v3433_v13  ;;  %v2390_v15 = vpop.f32.mrb[10].mxu1 }
 0x37d   :  { %v3440_v17 = vsub.f32 %v3359_v27, %v2390_v15  ;;  %v652_v18 = vpop.f32.mrb[11].mxu1  ;;  %v282_v15 = vld [vmem:[#allocation14 + $0x70] sm:$0xff] }
 0x37e   :  { %v3443_v19 = vsub.f32 %v3355_v26, %v652_v18  ;;  %2429 = vmatprep.mubr.f32.mxu0 %v689_v14  ;;  %v281_v14 = vld [vmem:[#allocation14 + $0x68] sm:$0xff] }
 0x37f   :  { %2430 = vmatmul.mubr.f32.vlgmr.msra.gmra.mrb[8].mxu0 %v690_v16  ;;  %v692_v21 = vmul.f32 %v3440_v17, %v3440_v17  ;;  %v283_v16 = vld [vmem:[#allocation14 + $0x78] sm:$0xff] }
 0x380   :  { %v691_v9 = vmul.f32 %v3443_v19, %v3443_v19  ;;  %v2393_v20 = vpop.f32.mrb[12].mxu1 }
 0x381   :  { %v3450_v22 = vsub.f32 %v3365_v29, %v2393_v20  ;;  %v662_v23 = vpop.f32.mrb[13].mxu1 }
 0x382   :  { %v3453_v24 = vsub.f32 %v3361_v28, %v662_v23  ;;  %2432 = vmatprep.mubr.f32.mxu0 %v691_v9 }
 0x383   :  { %2433 = vmatmul.mubr.f32.gmra.mrb[10].mxu0 %v692_v21  ;;  %v694_v27 = vmul.f32 %v3450_v22, %v3450_v22 }
 0x384   :  { %v693_v25 = vmul.f32 %v3453_v24, %v3453_v24  ;;  %v2396_v26 = vpop.f32.mrb[14].mxu1 }
 0x385   :  { %v3460_v33 = vsub.f32 %v3371_v31, %v2396_v26  ;;  %v672_v34 = vpop.f32.mrb[15].mxu1  ;;  %v229_v31 = vld [vmem:[#allocation10 + $0x8] sm:$0xff] }
 0x386   :  { %v3463_v29 = vsub.f32 %v3367_v30, %v672_v34  ;;  %2435 = vmatprep.mubr.f32.mxu0 %v693_v25  ;;  %v231_v30 = vld [vmem:[#allocation10 + $0x18] sm:$0xff]  ;;  %938 = vperm.xlu0 %2692, %v229_v31  }
 0x387   :  { %2436 = vmatmul.mubr.f32.gmra.mrb[12].mxu0 %v694_v27  ;;  %v696_v35 = vmul.f32 %v3460_v33, %v3460_v33  ;;  %948 = vperm.xlu1 %2693, %v231_v30  }
 0x388   :  { %v695_v28 = vmul.f32 %v3463_v29, %v3463_v29 }
 0x38a   :  { %2438 = vmatprep.mubr.f32.mxu0 %v695_v28  ;;  %953 = vperm.xlu0 %2692, %v232_v39   ;;  %v934_v39 = vpop.permute.xlu0 %933 }
 0x38b   :  { %2439 = vmatmul.mubr.f32.gmra.mrb[14].mxu0 %v696_v35  ;;  %958 = vperm.xlu1 %2693, %v233_v40   ;;  %v944_v40 = vpop.permute.xlu1 %943 }
 0x38e   :  { %963 = vperm.xlu0 %2692, %v234_v41  }
 0x38f   :  { %968 = vperm.xlu1 %2693, %v235_v42  }
 0x392   :  { %1118 = vperm.xlu0 %2692, %v236_v43  }
 0x393   :  { %1123 = vperm.xlu1 %2693, %v237_v44  }
 0x396   :  { %1128 = vperm.xlu0 %2692, %v238_v45  }
 0x397   :  { %1133 = vperm.xlu1 %2693, %v239_v57  }
 0x39a   :  { %1138 = vperm.xlu0 %2692, %v240_v58  }
 0x39b   :  { %1143 = vperm.xlu1 %2693, %v241_v59  }
 0x39e   :  { %1148 = vperm.xlu0 %2692, %v242_v60  }
 0x39f   :  { %1153 = vperm.xlu1 %2693, %v243_v61  }
 0x3a2   :  { %1170 = vperm.xlu0 %2692, %v268_v62  }
 0x3a3   :  { %1175 = vperm.xlu1 %2693, %v269_v63  }
 0x3a6   :  { %1180 = vperm.xlu0 %2692, %v270_v0  }
 0x3a7   :  { %1185 = vperm.xlu1 %2693, %v271_v1  }
 0x3aa   :  { %1190 = vperm.xlu0 %2692, %v272_v2  }
 0x3ab   :  { %1195 = vperm.xlu1 %2693, %v273_v3  }
 0x3ae   :  { %1200 = vperm.xlu0 %2692, %v274_v4  }
 0x3af   :  { %1205 = vperm.xlu1 %2693, %v275_v5  }
 0x3b2   :  { %1210 = vperm.xlu0 %2692, %v276_v6  }
 0x3b3   :  { %1215 = vperm.xlu1 %2693, %v277_v7  }
 0x3b6   :  { %1220 = vperm.xlu0 %2692, %v278_v8  }
 0x3b7   :  { %1225 = vperm.xlu1 %2693, %v279_v10  }
 0x3ba   :  { %1230 = vperm.xlu0 %2692, %v280_v12  }
 0x3bb   :  { %1235 = vperm.xlu1 %2693, %v281_v14  }
 0x3be   :  { %1240 = vperm.xlu0 %2692, %v282_v15  }
 0x3bf   :  { %1245 = vperm.xlu1 %2693, %v283_v16  }
 0x405   :  { %v939_v61 = vpop.permute.xlu0 %938 }
 0x406   :  { %v949_v63 = vpop.permute.xlu1 %948 }
 0x409   :  { %v954_v5 = vpop.permute.xlu0 %953 }
 0x40a   :  { %v959_v8 = vpop.permute.xlu1 %958 }
 0x452   :  { %v2431_v18 = vpop.f32.mrb[8].mxu0 }
 0x453   :  { %v763_v9 = vpop.f32.mrb[9].mxu0 }
 0x454   :  { %v2659_v20 = vpack.c.bf16 %v2431_v18, %v763_v9  ;;  %v964_v18 = vpop.permute.xlu0 %963  ;;  %v969_v9 = vpop.permute.xlu1 %968 }
 0x456   :  { %v2434_v21 = vpop.f32.mrb[10].mxu0  ;;  %2660 = vmatprep.subr.bf16.mxu1 %v2659_v20 }
 0x457   :  { %v773_v23 = vpop.f32.mrb[11].mxu0  ;;  %2662 = vmatpush3.bf16.msra.mxu1 %v2659_v20 }
 0x458   :  { %v2663_v25 = vpack.c.bf16 %v2434_v21, %v773_v23  ;;  %v2694_v23 = vld [vmem:[#allocation13] sm:$0xff]  }
 0x459   :  { %2491 = vmatprep.mubr.msk.bf16.mxu0 %vm413_vm0, %v2694_v23 }
 0x45a   :  { %v2437_v26 = vpop.f32.mrb[12].mxu0  ;;  %2664 = vmatprep.subr.bf16.mxu1 %v2663_v25 }
 0x45b   :  { %v783_v27 = vpop.f32.mrb[13].mxu0  ;;  %2666 = vmatpush3.bf16.msra.mxu1 %v2663_v25  ;;  %v1124_v25 = vpop.permute.xlu1 %1123 }
 0x45c   :  { %v2667_v34 = vpack.c.bf16 %v2437_v26, %v783_v27  ;;  %v1119_v26 = vpop.permute.xlu0 %1118 }
 0x45e   :  { %v2440_v28 = vpop.f32.mrb[14].mxu0  ;;  %2668 = vmatprep.subr.bf16.mxu1 %v2667_v34 }
 0x45f   :  { %v793_v35 = vpop.f32.mrb[15].mxu0  ;;  %2670 = vmatpush3.bf16.msra.mxu1 %v2667_v34 }
 0x460   :  { %v2671_v36 = vpack.c.bf16 %v2440_v28, %v793_v35  ;;  %v1134_v35 = vpop.permute.xlu1 %1133 }
 0x462   :  { %2672 = vmatprep.subr.bf16.mxu1 %v2671_v36 }
 0x463   :  { %2674 = vmatpush3.bf16.msra.mxu1 %v2671_v36 }
 0x464   :  { %2469 = vmatprep.subr.mxu1 %v3414_v56 }
 0x466   :  { %2458 = vmatmul.mubr.msk.f32.vlgmr.msra.gmra.mrb[16].mxu1 %vm413_vm0, %v2149_v47 }
 0x467   :  { %2460 = vmatprep.mubr.msk.f32.mxu1 %vm413_vm0, %v2152_v48  ;;  %2470 = vmatpush3.msra.mxu1 %v3414_v56 }
 0x46a   :  { %2461 = vmatmul.mubr.msk.f32.gmra.mrb[18].mxu1 %vm413_vm0, %v2153_v50 }
 0x46b   :  { %2463 = vmatprep.mubr.msk.f32.mxu1 %vm413_vm0, %v2156_v51 }
 0x46e   :  { %2464 = vmatmul.mubr.msk.f32.gmra.mrb[20].mxu1 %vm413_vm0, %v2157_v53 }
 0x46f   :  { %2466 = vmatprep.mubr.msk.f32.mxu1 %vm413_vm0, %v2160_v54 }
 0x472   :  { %2467 = vmatmul.mubr.msk.f32.gmra.mrb[22].mxu1 %vm413_vm0, %v2161_v55 }
 0x539   :  { %v2459_v32 = vpop.f32.mrb[16].mxu1 }
 0x53a   :  { %v908_v46 = vmul.f32 0.03125, %v2459_v32  ;;  %v868_v47 = vpop.f32.mrb[17].mxu1  ;;  %v1129_v32 = vpop.permute.xlu0 %1128 }
 0x53b   :  { %v907_v48 = vmul.f32 0.03125, %v868_v47 }
 0x53c   :  { %v916_v50 = vadd.f32 1e-05, %v908_v46 }
 0x53d   :  { %v915_v56 = vadd.f32 1e-05, %v907_v48  ;;  %v2462_v37 = vpop.f32.mrb[18].mxu1 }
 0x53e   :  { %2710 = vrsqrt.f32 %v916_v50  ;;  %v910_v51 = vmul.f32 0.03125, %v2462_v37  ;;  %v878_v49 = vpop.f32.mrb[19].mxu1 }
 0x53f   :  { %2712 = vrsqrt.f32 %v915_v56  ;;  %v909_v53 = vmul.f32 0.03125, %v878_v49 }
 0x540   :  { %v918_v38 = vadd.f32 1e-05, %v910_v51 }
 0x541   :  { %v917_v31 = vadd.f32 1e-05, %v909_v53  ;;  %v2465_v30 = vpop.f32.mrb[20].mxu1  ;;  %v1144_v53 = vpop.permute.xlu1 %1143 }
 0x542   :  { %2714 = vrsqrt.f32 %v918_v38  ;;  %v912_v54 = vmul.f32 0.03125, %v2465_v30  ;;  %v888_v52 = vpop.f32.mrb[21].mxu1 }
 0x543   :  { %2716 = vrsqrt.f32 %v917_v31  ;;  %v911_v55 = vmul.f32 0.03125, %v888_v52 }
 0x544   :  { %v920_v41 = vadd.f32 1e-05, %v912_v54 }
 0x545   :  { %v919_v42 = vadd.f32 1e-05, %v911_v55  ;;  %v2468_v43 = vpop.f32.mrb[22].mxu1 }
 0x546   :  { %2718 = vrsqrt.f32 %v920_v41  ;;  %v914_v44 = vmul.f32 0.03125, %v2468_v43  ;;  %v898_v45 = vpop.f32.mrb[23].mxu1  ;;  %v1154_v41 = vpop.permute.xlu1 %1153 }
 0x547   :  { %2720 = vrsqrt.f32 %v919_v42  ;;  %v913_v57 = vmul.f32 0.03125, %v898_v45 }
 0x548   :  { %v2711_v58 = vpop.eup %2710  ;;  %v922_v59 = vadd.f32 1e-05, %v914_v44 }
 0x549   :  { %v2713_v60 = vpop.eup %2712  ;;  %v921_v62 = vadd.f32 1e-05, %v913_v57  ;;  %v972_v1 = vmul.f32 %v2711_v58, %v939_v61  ;;  %v2696_v58 = vld [vmem:[#allocation13 + $0x10] sm:$0xff]   ;;  %v2701_v61 = vld [vmem:[#allocation13 + $0x38] sm:$0xff]  }
 0x54a   :  { %2722 = vrsqrt.f32 %v922_v59  ;;  %v971_v0 = vmul.f32 %v2713_v60, %v934_v39  ;;  %v2698_v59 = vld [vmem:[#allocation13 + $0x20] sm:$0xff]   ;;  %v2700_v60 = vld [vmem:[#allocation13 + $0x30] sm:$0xff]  }
 0x54b   :  { %2724 = vrsqrt.f32 %v921_v62 }
 0x54c   :  { %v2715_v2 = vpop.eup %2714  ;;  %2471 = vmatprep.mubr.msk.f32.mxu1 %vm551_vm1, %v971_v0 }
 0x54d   :  { %v2717_v3 = vpop.eup %2716  ;;  %2472 = vmatmul.mubr.msk.f32.vlgmr.msra.gmra.mrb[24].mxu1 %vm551_vm1, %v972_v1  ;;  %v974_v6 = vmul.f32 %v2715_v2, %v949_v63  ;;  %v1176_v63 = vpop.permute.xlu1 %1175 }
 0x54e   :  { %v973_v4 = vmul.f32 %v2717_v3, %v944_v40 }
 0x550   :  { %v2719_v7 = vpop.eup %2718  ;;  %2474 = vmatprep.mubr.msk.f32.mxu1 %vm551_vm1, %v973_v4 }
 0x551   :  { %v2721_v10 = vpop.eup %2720  ;;  %2475 = vmatmul.mubr.msk.f32.gmra.mrb[26].mxu1 %vm551_vm1, %v974_v6  ;;  %v976_v14 = vmul.f32 %v2719_v7, %v959_v8  ;;  %v1186_v1 = vpop.permute.xlu1 %1185 }
 0x552   :  { %v975_v12 = vmul.f32 %v2721_v10, %v954_v5 }
 0x554   :  { %v2723_v15 = vpop.eup %2722  ;;  %2477 = vmatprep.mubr.msk.f32.mxu1 %vm551_vm1, %v975_v12 }
 0x555   :  { %v2725_v16 = vpop.eup %2724  ;;  %2478 = vmatmul.mubr.msk.f32.gmra.mrb[28].mxu1 %vm551_vm1, %v976_v14  ;;  %v978_v21 = vmul.f32 %v2723_v15, %v969_v9  ;;  %v1196_v3 = vpop.permute.xlu1 %1195 }
 0x556   :  { %v977_v20 = vmul.f32 %v2725_v16, %v964_v18 }
 0x558   :  { %2480 = vmatprep.mubr.msk.f32.mxu1 %vm551_vm1, %v977_v20 }
 0x559   :  { %2481 = vmatmul.mubr.msk.f32.gmra.mrb[30].mxu1 %vm551_vm1, %v978_v21  ;;  %v1206_v7 = vpop.permute.xlu1 %1205 }
 0x55d   :  { %v1216_v21 = vpop.permute.xlu1 %1215 }
 0x620   :  { %v2473_v27 = vpop.f32.mrb[24].mxu1 }
 0x621   :  { %v1109_v34 = vmul.f32 %v2473_v27, %v3430_v11  ;;  %v1069_v28 = vpop.f32.mrb[25].mxu1  ;;  %v1139_v11 = vpop.permute.xlu0 %1138 }
 0x622   :  { %v1108_v36 = vmul.f32 %v1069_v28, %v3433_v13 }
 0x623   :  { %v1157_v46 = vadd.f32 %v1124_v25, %v1109_v34 }
 0x624   :  { %v1156_v47 = vadd.f32 %v1119_v26, %v1108_v36  ;;  %v2476_v48 = vpop.f32.mrb[26].mxu1 }
 0x625   :  { %v1111_v50 = vmul.f32 %v2476_v48, %v3440_v17  ;;  %v1079_v56 = vpop.f32.mrb[27].mxu1  ;;  %v1149_v44 = vpop.permute.xlu0 %1148 }
 0x626   :  { %v1110_v37 = vmul.f32 %v1079_v56, %v3443_v19  ;;  %v1164_v51 = vpack.c.bf16 %v1157_v46, %v1156_v47  ;;  %v1226_v47 = vpop.permute.xlu1 %1225 }
 0x627   :  { %v1159_v49 = vadd.f32 %v1134_v35, %v1111_v50 }
 0x628   :  { %v1158_v38 = vadd.f32 %v1129_v32, %v1110_v37  ;;  %v2479_v31 = vpop.f32.mrb[28].mxu1  ;;  %2483 = vmatprep.subr.bf16.mxu0 %v1164_v51 }
 0x629   :  { %v1113_v30 = vmul.f32 %v2479_v31, %v3450_v22  ;;  %v1089_v54 = vpop.f32.mrb[29].mxu1  ;;  %2484 = vmatpush3.bf16.msra.mxu0 %v1164_v51  ;;  %v1171_v62 = vpop.permute.xlu0 %1170 }
 0x62a   :  { %v1112_v13 = vmul.f32 %v1089_v54, %v3453_v24  ;;  %v1165_v52 = vpack.c.bf16 %v1159_v49, %v1158_v38  ;;  %v2695_v24 = vld [vmem:[#allocation13 + $0x8] sm:$0xff]   ;;  %v1236_v31 = vpop.permute.xlu1 %1235 }
 0x62b   :  { %v1161_v39 = vadd.f32 %v1144_v53, %v1113_v30 }
 0x62c   :  { %v1160_v55 = vadd.f32 %v1139_v11, %v1112_v13  ;;  %v2482_v17 = vpop.f32.mrb[30].mxu1  ;;  %2485 = vmatprep.subr.bf16.mxu0 %v1165_v52 }
 0x62d   :  { %v1115_v19 = vmul.f32 %v2482_v17, %v3460_v33  ;;  %v1099_v40 = vpop.f32.mrb[31].mxu1  ;;  %2486 = vmatpush3.bf16.msra.mxu0 %v1165_v52  ;;  %v2697_v33 = vld [vmem:[#allocation13 + $0x18] sm:$0xff]   ;;  %v1181_v0 = vpop.permute.xlu0 %1180 }
 0x62e   :  { %v1114_v42 = vmul.f32 %v1099_v40, %v3463_v29  ;;  %v1166_v43 = vpack.c.bf16 %v1161_v39, %v1160_v55  ;;  %v2699_v29 = vld [vmem:[#allocation13 + $0x28] sm:$0xff]   ;;  %v1246_v17 = vpop.permute.xlu1 %1245 }
 0x62f   :  { %v1163_v45 = vadd.f32 %v1154_v41, %v1115_v19 }
 0x630   :  { %v1162_v22 = vadd.f32 %v1149_v44, %v1114_v42  ;;  %2487 = vmatprep.subr.bf16.mxu0 %v1166_v43 }
 0x631   :  { %2488 = vmatpush3.bf16.msra.mxu0 %v1166_v43  ;;  %v1191_v2 = vpop.permute.xlu0 %1190 }
 0x632   :  { %v1167_v57 = vpack.c.bf16 %v1163_v45, %v1162_v22 }
 0x634   :  { %2489 = vmatprep.subr.bf16.mxu0 %v1167_v57 }
 0x635   :  { %2490 = vmatpush3.bf16.msra.mxu0 %v1167_v57  ;;  %v1201_v5 = vpop.permute.xlu0 %1200 }
 0x638   :  { %2492 = vmatmul.mubr.msk.bf16.vlgmr.msra.gmra.mrb[16].mxu0 %vm413_vm0, %v2695_v24 }
 0x639   :  { %2495 = vmatprep.mubr.msk.bf16.mxu0 %vm413_vm0, %v2696_v58  ;;  %v1211_v20 = vpop.permute.xlu0 %1210 }
 0x63d   :  { %v1221_v32 = vpop.permute.xlu0 %1220 }
 0x640   :  { %2496 = vmatmul.mubr.msk.bf16.gmra.mrb[20].mxu0 %vm413_vm0, %v2697_v33 }
 0x641   :  { %2499 = vmatprep.mubr.msk.bf16.mxu0 %vm413_vm0, %v2698_v59  ;;  %v1231_v51 = vpop.permute.xlu0 %1230 }
 0x645   :  { %v1241_v39 = vpop.permute.xlu0 %1240 }
 0x648   :  { %2500 = vmatmul.mubr.msk.bf16.gmra.mrb[24].mxu0 %vm413_vm0, %v2699_v29 }
 0x649   :  { %2503 = vmatprep.mubr.msk.bf16.mxu0 %vm413_vm0, %v2700_v60 }
 0x650   :  { %2504 = vmatmul.mubr.msk.bf16.gmra.mrb[28].mxu0 %vm413_vm0, %v2701_v61 }
 0x70b   :  { %v2493_v4 = vpop.f32.mrb[16].mxu0 }
 0x70c   :  { %v1418_v6 = vpop.f32.mrb[17].mxu0  ;;  %v1427_v10 = vadd.f32 %v2493_v4, %v1181_v0  ;;  %v2704_v0 = vld [vmem:[#allocation13 + $0x50] sm:$0xff]  }
 0x70d   :  { %v2494_v8 = vpop.f32.mrb[18].mxu0  ;;  %v1419_v15 = vadd.f32 %v1418_v6, %v1171_v62  ;;  %v2702_v62 = vld [vmem:[#allocation13 + $0x40] sm:$0xff]  }
 0x70e   :  { %v1430_v12 = vadd.f32 %v2494_v8, %v1186_v1  ;;  %v1421_v14 = vpop.f32.mrb[19].mxu0  ;;  %2507 = vmatprep.mubr.msk.bf16.mxu0 %vm413_vm0, %v2702_v62  ;;  %v1525_v1 = vld [vmem:[#allocation19] sm:$0xff] }
 0x70f   :  { %v1422_v16 = vadd.f32 %v1421_v14, %v1176_v63  ;;  %v2703_v63 = vld [vmem:[#allocation13 + $0x48] sm:$0xff]   ;;  %v1527_v14 = vld [vmem:[#allocation19 + $0x10] sm:$0xff] }
 0x710   :  { %v1514_v18 = vpack.c.bf16 %v1430_v12, %v1427_v10  ;;  %2508 = vmatmul.mubr.msk.bf16.gmra.mrb[32].mxu0 %vm413_vm0, %v2703_v63  ;;  %v1526_v10 = vld [vmem:[#allocation19 + $0x8] sm:$0xff] }
 0x711   :  { %v1513_v9 = vpack.c.bf16 %v1422_v16, %v1419_v15  ;;  %2511 = vmatprep.mubr.msk.bf16.mxu0 %vm413_vm0, %v2704_v0 }
 0x713   :  { %v2497_v23 = vpop.f32.mrb[20].mxu0  ;;  %1541 = vxpose.xlu0.c.b16.start [1/4] (short) %v1513_v9, 128 }
 0x714   :  { %v1434_v25 = vpop.f32.mrb[21].mxu0  ;;  %v1443_v27 = vadd.f32 %v2497_v23, %v1201_v5 }
 0x715   :  { %v2498_v26 = vpop.f32.mrb[22].mxu0  ;;  %v1435_v35 = vadd.f32 %v1434_v25, %v1191_v2  ;;  %v1530_v25 = vld [vmem:[#allocation19 + $0x28] sm:$0xff] }
 0x716   :  { %v1446_v34 = vadd.f32 %v2498_v26, %v1206_v7  ;;  %v1437_v28 = vpop.f32.mrb[23].mxu0 }
 0x717   :  { %v1438_v36 = vadd.f32 %v1437_v28, %v1196_v3  ;;  %1542 = vxpose.xlu0.c.b16.cont [2/4] (short) %v1514_v18, 128  ;;  %v1528_v3 = vld [vmem:[#allocation19 + $0x18] sm:$0xff]  ;;  %v1529_v18 = vld [vmem:[#allocation19 + $0x20] sm:$0xff] }
 0x718   :  { %v1516_v46 = vpack.c.bf16 %v1446_v34, %v1443_v27  ;;  %v1536_v34 = vld [vmem:[#allocation19 + $0x58] sm:$0xff] }
 0x719   :  { %v1515_v48 = vpack.c.bf16 %v1438_v36, %v1435_v35  ;;  %v2705_v28 = vld [vmem:[#allocation13 + $0x58] sm:$0xff]  }
 0x71a   :  { %2512 = vmatmul.mubr.msk.bf16.gmra.mrb[36].mxu0 %vm413_vm0, %v2705_v28 }
 0x71b   :  { %v2501_v50 = vpop.f32.mrb[24].mxu0  ;;  %1543 = vxpose.xlu0.c.b16.cont [3/4] (short) %v1515_v48, 128 }
 0x71c   :  { %v1450_v56 = vpop.f32.mrb[25].mxu0  ;;  %v1459_v49 = vadd.f32 %v2501_v50, %v1221_v32  ;;  %v1531_v32 = vld [vmem:[#allocation19 + $0x30] sm:$0xff]  ;;  %v1532_v50 = vld [vmem:[#allocation19 + $0x38] sm:$0xff] }
 0x71d   :  { %v2502_v37 = vpop.f32.mrb[26].mxu0  ;;  %v1451_v11 = vadd.f32 %v1450_v56, %v1211_v20 }
 0x71e   :  { %v1462_v53 = vadd.f32 %v2502_v37, %v1226_v47  ;;  %v1453_v38 = vpop.f32.mrb[27].mxu0  ;;  %v1533_v37 = vld [vmem:[#allocation19 + $0x40] sm:$0xff] }
 0x71f   :  { %v1454_v30 = vadd.f32 %v1453_v38, %v1216_v21  ;;  %1544 = vxpose.xlu0.c.b16.end [4/4] (short) %v1516_v46, 128 }
 0x720   :  { %v1518_v54 = vpack.c.bf16 %v1462_v53, %v1459_v49  ;;  %v1538_v49 = vld [vmem:[#allocation19 + $0x68] sm:$0xff] }
 0x721   :  { %v1517_v13 = vpack.c.bf16 %v1454_v30, %v1451_v11 }
 0x723   :  { %v2505_v52 = vpop.f32.mrb[28].mxu0  ;;  %2515 = vmatprep.subr.bf16.mxu1 %v1517_v13 }
 0x724   :  { %v1466_v55 = vpop.f32.mrb[29].mxu0  ;;  %2516 = vmatpush3.bf16.msra.mxu1 %v1517_v13  ;;  %v1475_v40 = vadd.f32 %v2505_v52, %v1241_v39  ;;  %v1534_v13 = vld [vmem:[#allocation19 + $0x48] sm:$0xff] }
 0x725   :  { %v2506_v19 = vpop.f32.mrb[30].mxu0  ;;  %2517 = vmatprep.subr.bf16.mxu1 %v1518_v54  ;;  %v1467_v43 = vadd.f32 %v1466_v55, %v1231_v51  ;;  %v1535_v55 = vld [vmem:[#allocation19 + $0x50] sm:$0xff] }
 0x726   :  { %v1478_v41 = vadd.f32 %v2506_v19, %v1246_v17  ;;  %v1469_v42 = vpop.f32.mrb[31].mxu0  ;;  %v1537_v17 = vld [vmem:[#allocation19 + $0x60] sm:$0xff] }
 0x727   :  { %v1470_v44 = vadd.f32 %v1469_v42, %v1236_v31  ;;  %v1540_v31 = vld [vmem:[#allocation19 + $0x78] sm:$0xff] }
 0x728   :  { %v1520_v45 = vpack.c.bf16 %v1478_v41, %v1475_v40  ;;  %2518 = vmatpush3.bf16.msra.mxu1 %v1518_v54  ;;  %v1539_v41 = vld [vmem:[#allocation19 + $0x70] sm:$0xff] }
 0x729   :  { %v1519_v22 = vpack.c.bf16 %v1470_v44, %v1467_v43 }
 0x72b   :  { %2519 = vmatprep.subr.bf16.mxu1 %v1519_v22 }
 0x72c   :  { %2520 = vmatpush3.bf16.msra.mxu1 %v1519_v22 }
 0x72d   :  { %2521 = vmatprep.subr.bf16.mxu1 %v1520_v45 }
 0x730   :  { %2522 = vmatpush3.bf16.msra.mxu1 %v1520_v45 }
 0x779   :  { %v1549_v57 = vpop.trf.xlu0 }
 0x77a   :  { %2523 = vmatprep.mubr.msk.bf16.mxu1 %vm413_vm0, %v1549_v57 }
 0x77d   :  { %v1550_v24 = vpop.trf.xlu0 }
 0x77e   :  { %2524 = vmatmul.mubr.msk.bf16.vlgmr.msra.gmra.mrb[32].mxu1 %vm413_vm0, %v1550_v24 }
 0x781   :  { %v1551_v58 = vpop.trf.xlu0 }
 0x782   :  { %2527 = vmatprep.mubr.msk.bf16.mxu1 %vm413_vm0, %v1551_v58 }
 0x785   :  { %v1552_v33 = vpop.trf.xlu0 }
 0x786   :  { %2528 = vmatmul.mubr.msk.bf16.gmra.mrb[36].mxu1 %vm413_vm0, %v1552_v33 }
 0x789   :  { %v1553_v59 = vpop.trf.xlu0 }
 0x78a   :  { %2531 = vmatprep.mubr.msk.bf16.mxu1 %vm413_vm0, %v1553_v59 }
 0x78d   :  { %v1554_v29 = vpop.trf.xlu0 }
 0x78e   :  { %2532 = vmatmul.mubr.msk.bf16.gmra.mrb[40].mxu1 %vm413_vm0, %v1554_v29 }
 0x791   :  { %v1555_v60 = vpop.trf.xlu0 }
 0x792   :  { %2535 = vmatprep.mubr.msk.bf16.mxu1 %vm413_vm0, %v1555_v60 }
 0x795   :  { %v1556_v61 = vpop.trf.xlu0 }
 0x796   :  { %2536 = vmatmul.mubr.msk.bf16.gmra.mrb[44].mxu1 %vm413_vm0, %v1556_v61 }
 0x851   :  { %v2525_v2 = vpop.f32.mrb[32].mxu1 }
 0x852   :  { %v1615_v4 = vpop.f32.mrb[33].mxu1  ;;  %v1624_v9 = vadd.f32 %v2525_v2, %v1527_v14 }
 0x853   :  { %v3527_v5 = vadd.f32 %v1615_v4, %v1525_v1  ;;  %v2526_v6 = vpop.f32.mrb[34].mxu1 }
 0x854   :  { %v3529_v7 = vadd.f32 %v2526_v6, %v1528_v3  ;;  %v1618_v8 = vpop.f32.mrb[35].mxu1 }
 0x855   :  { %1678 = vmax.xlane.f32.xlu1 %v3527_v5  ;;  %v3533_v12 = vadd.f32 %v1618_v8, %v1526_v10 }
 0x856   :  { %1684 = vmax.xlane.f32.xlu0 %v3529_v7 }
 0x859   :  { %1680 = vmax.xlane.f32.xlu1 %v3533_v12  ;;  %v2529_v15 = vpop.f32.mrb[36].mxu1 }
 0x85a   :  { %v1631_v16 = vpop.f32.mrb[37].mxu1  ;;  %v1640_v48 = vadd.f32 %v2529_v15, %v1531_v32 }
 0x85b   :  { %v2530_v20 = vpop.f32.mrb[38].mxu1  ;;  %v3536_v23 = vadd.f32 %v1631_v16, %v1529_v18 }
 0x85c   :  { %v1634_v21 = vpop.f32.mrb[39].mxu1  ;;  %v3546_v53 = vadd.f32 %v2530_v20, %v1532_v50 }
 0x85d   :  { %1682 = vmax.xlane.f32.xlu1 %v1624_v9  ;;  %v3538_v26 = vadd.f32 %v1634_v21, %v1530_v25 }
 0x861   :  { %1686 = vmax.xlane.f32.xlu1 %v3536_v23  ;;  %v2533_v27 = vpop.f32.mrb[40].mxu1 }
 0x862   :  { %v1647_v35 = vpop.f32.mrb[41].mxu1  ;;  %v3561_v19 = vadd.f32 %v2533_v27, %v1535_v55 }
 0x863   :  { %v2534_v36 = vpop.f32.mrb[42].mxu1  ;;  %v3548_v30 = vadd.f32 %v1647_v35, %v1533_v37 }
 0x864   :  { %v3542_v46 = vadd.f32 %v2534_v36, %v1536_v34  ;;  %v1650_v47 = vpop.f32.mrb[43].mxu1 }
 0x865   :  { %1688 = vmax.xlane.f32.xlu1 %v3538_v26  ;;  %v3556_v39 = vadd.f32 %v1650_v47, %v1534_v13 }
 0x866   :  { %1700 = vmax.xlane.f32.xlu0 %v3542_v46 }
 0x869   :  { %1690 = vmax.xlane.f32.xlu1 %v1640_v48  ;;  %v2537_v56 = vpop.f32.mrb[44].mxu1 }
 0x86a   :  { %v1663_v51 = vpop.f32.mrb[45].mxu1  ;;  %v3566_v42 = vadd.f32 %v2537_v56, %v1539_v41 }
 0x86b   :  { %v2538_v38 = vpop.f32.mrb[46].mxu1  ;;  %v3563_v40 = vadd.f32 %v1663_v51, %v1537_v17 }
 0x86c   :  { %v1666_v11 = vpop.f32.mrb[47].mxu1  ;;  %v3553_v52 = vadd.f32 %v2538_v38, %v1540_v31 }
 0x86d   :  { %v3550_v54 = vadd.f32 %v1666_v11, %v1538_v49  ;;  %1692 = vmax.xlane.f32.xlu1 %v3546_v53 }
 0x86f   :  { %1704 = vmax.xlane.f32.xlu0 %v3550_v54 }
 0x871   :  { %1694 = vmax.xlane.f32.xlu1 %v3548_v30 }
 0x873   :  { %1708 = vmax.xlane.f32.xlu0 %v3553_v52 }
 0x875   :  { %1696 = vmax.xlane.f32.xlu1 %v3556_v39 }
 0x879   :  { %1698 = vmax.xlane.f32.xlu1 %v3561_v19 }
 0x87d   :  { %1702 = vmax.xlane.f32.xlu1 %v3563_v40 }
 0x881   :  { %1706 = vmax.xlane.f32.xlu1 %v3566_v42 }
 0x8e2   :  { %v1679_v43 = vpop.xlane.xlu1 %1678 }
 0x8e3   :  { %v1710_v44 = vsub.f32 %v3527_v5, %v1679_v43  ;;  %v1685_v45 = vpop.xlane.xlu0 %1684  ;;  %v284_v43 = vld [vmem:[#allocation14 + $0x80] sm:$0xff] }
 0x8e4   :  { %v1713_v57 = vsub.f32 %v3529_v7, %v1685_v45  ;;  %v285_v45 = vld [vmem:[#allocation14 + $0x88] sm:$0xff] }
 0x8e5   :  { %v1726_v22 = vmul.f32 1.442695, %v1710_v44  ;;  %v3632_v44 = vpop.f32.mrb[32].mxu0 }
 0x8e6   :  { %v1681_v24 = vpop.xlane.xlu1 %1680  ;;  %v1732_v59 = vmul.f32 1.442695, %v1713_v57 }
 0x8e7   :  { %2726 = vpow2.f32 %v1726_v22  ;;  %v1711_v58 = vsub.f32 %v3533_v12, %v1681_v24  ;;  %v3634_v22 = vpop.f32.mrb[33].mxu0 }
 0x8e8   :  { %v3636_v57 = vpop.f32.mrb[34].mxu0 }
 0x8e9   :  { %v1728_v33 = vmul.f32 1.442695, %v1711_v58  ;;  %v3638_v24 = vpop.f32.mrb[35].mxu0  ;;  %v286_v58 = vld [vmem:[#allocation14 + $0x90] sm:$0xff] }
 0x8ea   :  { %v1683_v29 = vpop.xlane.xlu1 %1682 }
 0x8eb   :  { %2728 = vpow2.f32 %v1728_v33  ;;  %v1712_v60 = vsub.f32 %v1624_v9, %v1683_v29  ;;  %v288_v33 = vld [vmem:[#allocation14 + $0xa0] sm:$0xff] }
 0x8ec   :  { %2730 = vpow2.f32 %v1732_v59  ;;  %v3640_v59 = vpop.f32.mrb[36].mxu0 }
 0x8ed   :  { %v1730_v61 = vmul.f32 1.442695, %v1712_v60  ;;  %v3642_v29 = vpop.f32.mrb[37].mxu0  ;;  %v287_v60 = vld [vmem:[#allocation14 + $0x98] sm:$0xff] }
 0x8ee   :  { %v1687_v62 = vpop.xlane.xlu1 %1686 }
 0x8ef   :  { %2732 = vpow2.f32 %v1730_v61  ;;  %v1714_v63 = vsub.f32 %v3536_v23, %v1687_v62  ;;  %v290_v61 = vld [vmem:[#allocation14 + $0xb0] sm:$0xff]  ;;  %v289_v62 = vld [vmem:[#allocation14 + $0xa8] sm:$0xff] }
 0x8f1   :  { %v3574_v0 = vpop.eup %2726  ;;  %v1734_v1 = vmul.f32 1.442695, %v1714_v63  ;;  %v300_v63 = vld [vmem:[#allocation17] sm:$0xff] }
 0x8f2   :  { %v1689_v2 = vpop.xlane.xlu1 %1688  ;;  %1758 = vadd.xlane.f32.xlu1 %v3574_v0 }
 0x8f3   :  { %2734 = vpow2.f32 %v1734_v1  ;;  %v1715_v3 = vsub.f32 %v3538_v26, %v1689_v2  ;;  %v1701_v18 = vpop.xlane.xlu0 %1700  ;;  %v3644_v1 = vpop.f32.mrb[38].mxu0 }
 0x8f4   :  { %v1721_v27 = vsub.f32 %v3542_v46, %v1701_v18  ;;  %v3646_v2 = vpop.f32.mrb[39].mxu0  ;;  %v307_v18 = vld [vmem:[#allocation17 + $0x38] sm:$0xff] }
 0x8f5   :  { %v3578_v4 = vpop.eup %2728  ;;  %v1736_v5 = vmul.f32 1.442695, %v1715_v3  ;;  %v291_v3 = vld [vmem:[#allocation14 + $0xb8] sm:$0xff] }
 0x8f6   :  { %v1691_v6 = vpop.xlane.xlu1 %1690  ;;  %1760 = vadd.xlane.f32.xlu0 %v3578_v4  ;;  %v3581_v8 = vpop.eup %2730  ;;  %v1748_v32 = vmul.f32 1.442695, %v1721_v27 }
 0x8f7   :  { %2736 = vpow2.f32 %v1736_v5  ;;  %v1716_v7 = vsub.f32 %v1640_v48, %v1691_v6  ;;  %v302_v5 = vld [vmem:[#allocation17 + $0x10] sm:$0xff]  ;;  %v301_v6 = vld [vmem:[#allocation17 + $0x8] sm:$0xff] }
 0x8f9   :  { %v3583_v10 = vpop.eup %2732  ;;  %v1738_v12 = vmul.f32 1.442695, %v1716_v7  ;;  %v304_v7 = vld [vmem:[#allocation17 + $0x20] sm:$0xff] }
 0x8fa   :  { %v1693_v14 = vpop.xlane.xlu1 %1692  ;;  %1762 = vadd.xlane.f32.xlu1 %v3583_v10  ;;  %1764 = vadd.xlane.f32.xlu0 %v3581_v8 }
 0x8fb   :  { %2738 = vpow2.f32 %v1738_v12  ;;  %v1717_v15 = vsub.f32 %v3546_v53, %v1693_v14  ;;  %v303_v12 = vld [vmem:[#allocation17 + $0x18] sm:$0xff]  ;;  %v306_v14 = vld [vmem:[#allocation17 + $0x30] sm:$0xff] }
 0x8fc   :  { %v1705_v25 = vpop.xlane.xlu0 %1704 }
 0x8fd   :  { %v3588_v16 = vpop.eup %2734  ;;  %v1740_v9 = vmul.f32 1.442695, %v1717_v15  ;;  %v1723_v48 = vsub.f32 %v3550_v54, %v1705_v25  ;;  %v305_v15 = vld [vmem:[#allocation17 + $0x28] sm:$0xff] }
 0x8fe   :  { %v1695_v20 = vpop.xlane.xlu1 %1694  ;;  %1766 = vadd.xlane.f32.xlu1 %v3588_v16 }
 0x8ff   :  { %2740 = vpow2.f32 %v1740_v9  ;;  %v1718_v21 = vsub.f32 %v3548_v30, %v1695_v20  ;;  %v1752_v53 = vmul.f32 1.442695, %v1723_v48 }
 0x900   :  { %v1709_v50 = vpop.xlane.xlu0 %1708 }
 0x901   :  { %v3592_v23 = vpop.eup %2736  ;;  %v1742_v26 = vmul.f32 1.442695, %v1718_v21  ;;  %v1725_v51 = vsub.f32 %v3553_v52, %v1709_v50 }
 0x902   :  { %v1697_v34 = vpop.xlane.xlu1 %1696  ;;  %1768 = vadd.xlane.f32.xlu0 %v3592_v23 }
 0x903   :  { %2742 = vpow2.f32 %v1742_v26  ;;  %v1719_v28 = vsub.f32 %v3556_v39, %v1697_v34  ;;  %v1756_v31 = vmul.f32 1.442695, %v1725_v51 }
 0x905   :  { %v3597_v35 = vpop.eup %2738  ;;  %v1744_v36 = vmul.f32 1.442695, %v1719_v28 }
 0x906   :  { %v1699_v47 = vpop.xlane.xlu1 %1698  ;;  %1770 = vadd.xlane.f32.xlu1 %v3597_v35 }
 0x907   :  { %2744 = vpow2.f32 %v1744_v36  ;;  %v1720_v56 = vsub.f32 %v3561_v19, %v1699_v47 }
 0x908   :  { %2746 = vpow2.f32 %v1748_v32 }
 0x909   :  { %v3602_v46 = vpop.eup %2740  ;;  %v1746_v37 = vmul.f32 1.442695, %v1720_v56 }
 0x90a   :  { %v1703_v49 = vpop.xlane.xlu1 %1702  ;;  %1772 = vadd.xlane.f32.xlu0 %v3602_v46 }
 0x90b   :  { %2748 = vpow2.f32 %v1746_v37  ;;  %v1722_v30 = vsub.f32 %v3563_v40, %v1703_v49 }
 0x90c   :  { %2750 = vpow2.f32 %v1752_v53 }
 0x90d   :  { %v3606_v38 = vpop.eup %2742  ;;  %2752 = vpow2.f32 %v1756_v31  ;;  %v1750_v52 = vmul.f32 1.442695, %v1722_v30 }
 0x90e   :  { %1774 = vadd.xlane.f32.xlu1 %v3606_v38  ;;  %v1707_v11 = vpop.xlane.xlu1 %1706 }
 0x90f   :  { %v1724_v54 = vsub.f32 %v3566_v42, %v1707_v11 }
 0x911   :  { %v3611_v13 = vpop.eup %2744  ;;  %v1754_v39 = vmul.f32 1.442695, %v1724_v54 }
 0x912   :  { %1776 = vadd.xlane.f32.xlu0 %v3611_v13  ;;  %v3614_v55 = vpop.eup %2746 }
 0x913   :  { %2754 = vpow2.f32 %v1754_v39 }
 0x914   :  { %2756 = vpow2.f32 %v1750_v52 }
 0x915   :  { %v3616_v17 = vpop.eup %2748 }
 0x916   :  { %1778 = vadd.xlane.f32.xlu1 %v3616_v17  ;;  %1780 = vadd.xlane.f32.xlu0 %v3614_v55  ;;  %v3620_v19 = vpop.eup %2750 }
 0x917   :  { %v3623_v40 = vpop.eup %2752 }
 0x91a   :  { %1784 = vadd.xlane.f32.xlu0 %v3620_v19 }
 0x91d   :  { %v3625_v41 = vpop.eup %2754 }
 0x91e   :  { %1786 = vadd.xlane.f32.xlu1 %v3625_v41  ;;  %1788 = vadd.xlane.f32.xlu0 %v3623_v40  ;;  %v3629_v42 = vpop.eup %2756 }
 0x922   :  { %1782 = vadd.xlane.f32.xlu1 %v3629_v42 }
 0x933   :  { %1250 = vperm.xlu1 %2693, %v284_v43  }
 0x934   :  { %1255 = vperm.xlu0 %2692, %v285_v45  }
 0x937   :  { %1260 = vperm.xlu1 %2693, %v286_v58  }
 0x938   :  { %1270 = vperm.xlu0 %2692, %v288_v33  }
 0x93b   :  { %1265 = vperm.xlu1 %2693, %v287_v60  }
 0x93c   :  { %1280 = vperm.xlu0 %2692, %v290_v61  }
 0x93f   :  { %1275 = vperm.xlu1 %2693, %v289_v62  }
 0x940   :  { %1901 = vperm.xlu0 %2692, %v300_v63  }
 0x943   :  { %1285 = vperm.xlu1 %2693, %v291_v3  }
 0x944   :  { %1911 = vperm.xlu0 %2692, %v302_v5  }
 0x947   :  { %1906 = vperm.xlu1 %2693, %v301_v6  }
 0x948   :  { %1921 = vperm.xlu0 %2692, %v304_v7  }
 0x94b   :  { %1916 = vperm.xlu1 %2693, %v303_v12  }
 0x94c   :  { %1931 = vperm.xlu0 %2692, %v306_v14  }
 0x94f   :  { %1926 = vperm.xlu1 %2693, %v305_v15  }
 0x953   :  { %1936 = vperm.xlu1 %2693, %v307_v18  }
 0x97f   :  { %v1759_v9 = vpop.xlane.xlu1 %1758 }
 0x980   :  { %2758 = vrcp.f32 %v1759_v9 }
 0x983   :  { %v1761_v20 = vpop.xlane.xlu0 %1760 }
 0x984   :  { %2760 = vrcp.f32 %v1761_v20 }
 0x987   :  { %v1763_v21 = vpop.xlane.xlu1 %1762  ;;  %v1765_v25 = vpop.xlane.xlu0 %1764 }
 0x988   :  { %2762 = vrcp.f32 %v1763_v21 }
 0x989   :  { %2764 = vrcp.f32 %v1765_v25 }
 0x98a   :  { %v2759_v27 = vpop.eup %2758 }
 0x98b   :  { %v1767_v26 = vpop.xlane.xlu1 %1766  ;;  %v1806_v36 = vmul.f32 %v2759_v27, %v3574_v0 }
 0x98c   :  { %2766 = vrcp.f32 %v1767_v26 }
 0x98e   :  { %v2761_v34 = vpop.eup %2760 }
 0x98f   :  { %v1769_v28 = vpop.xlane.xlu0 %1768  ;;  %v1807_v32 = vmul.f32 %v2761_v34, %v3578_v4 }
 0x990   :  { %2768 = vrcp.f32 %v1769_v28 }
 0x991   :  { %v1822_v47 = vpack.c.bf16 %v1807_v32, %v1806_v36 }
 0x992   :  { %v2763_v48 = vpop.eup %2762 }
 0x993   :  { %v2765_v50 = vpop.eup %2764  ;;  %v1771_v56 = vpop.xlane.xlu1 %1770  ;;  %2539 = vmatprep.subr.bf16.mxu0 %v1822_v47  ;;  %v1808_v37 = vmul.f32 %v2763_v48, %v3583_v10 }
 0x994   :  { %2540 = vmatpush3.bf16.xpose.msra.mxu0 %v1822_v47  ;;  %v1809_v51 = vmul.f32 %v2765_v50, %v3581_v8  ;;  %2770 = vrcp.f32 %v1771_v56 }
 0x996   :  { %v1823_v49 = vpack.c.bf16 %v1809_v51, %v1808_v37  ;;  %v2767_v31 = vpop.eup %2766 }
 0x997   :  { %v1773_v53 = vpop.xlane.xlu0 %1772  ;;  %v1810_v4 = vmul.f32 %v2767_v31, %v3588_v16 }
 0x998   :  { %2541 = vmatprep.subr.bf16.mxu0 %v1823_v49  ;;  %2772 = vrcp.f32 %v1773_v53 }
 0x99a   :  { %v2769_v0 = vpop.eup %2768 }
 0x99b   :  { %v1775_v11 = vpop.xlane.xlu1 %1774  ;;  %v1811_v30 = vmul.f32 %v2769_v0, %v3592_v23 }
 0x99c   :  { %2542 = vmatpush3.bf16.xpose.msra.mxu0 %v1823_v49  ;;  %2774 = vrcp.f32 %v1775_v11 }
 0x99d   :  { %v1824_v54 = vpack.c.bf16 %v1811_v30, %v1810_v4 }
 0x99e   :  { %v2771_v39 = vpop.eup %2770 }
 0x99f   :  { %2543 = vmatprep.subr.bf16.mxu0 %v1824_v54  ;;  %v1777_v10 = vpop.xlane.xlu0 %1776  ;;  %v1812_v45 = vmul.f32 %v2771_v39, %v3597_v35  ;;  %v2707_v39 = vld [vmem:[#allocation16 + $0x8] sm:$0xff]  }
 0x9a0   :  { %2776 = vrcp.f32 %v1777_v10 }
 0x9a2   :  { %v2773_v8 = vpop.eup %2772 }
 0x9a3   :  { %v1779_v52 = vpop.xlane.xlu1 %1778  ;;  %v1781_v43 = vpop.xlane.xlu0 %1780  ;;  %v1813_v58 = vmul.f32 %v2773_v8, %v3602_v46  ;;  %v2708_v8 = vld [vmem:[#allocation16 + $0x10] sm:$0xff]  }
 0x9a4   :  { %2778 = vrcp.f32 %v1779_v52  ;;  %2544 = vmatpush3.bf16.xpose.msra.mxu0 %v1824_v54  ;;  %v2709_v52 = vld [vmem:[#allocation16 + $0x18] sm:$0xff]  }
 0x9a5   :  { %2780 = vrcp.f32 %v1781_v43  ;;  %v1825_v16 = vpack.c.bf16 %v1813_v58, %v1812_v45 }
 0x9a6   :  { %v2775_v23 = vpop.eup %2774 }
 0x9a7   :  { %2545 = vmatprep.subr.bf16.mxu0 %v1825_v16  ;;  %v1785_v33 = vpop.xlane.xlu0 %1784  ;;  %v1814_v62 = vmul.f32 %v2775_v23, %v3606_v38 }
 0x9a8   :  { %2782 = vrcp.f32 %v1785_v33 }
 0x9aa   :  { %v2777_v60 = vpop.eup %2776 }
 0x9ab   :  { %v1787_v61 = vpop.xlane.xlu1 %1786  ;;  %v1815_v63 = vmul.f32 %v2777_v60, %v3611_v13  ;;  %v1789_v6 = vpop.xlane.xlu0 %1788 }
 0x9ac   :  { %2546 = vmatpush3.bf16.xpose.msra.mxu0 %v1825_v16 }
 0x9ad   :  { %v1826_v3 = vpack.c.bf16 %v1815_v63, %v1814_v62 }
 0x9ae   :  { %v2779_v5 = vpop.eup %2778 }
 0x9af   :  { %v2781_v35 = vpop.eup %2780  ;;  %v1783_v46 = vpop.xlane.xlu1 %1782  ;;  %2547 = vmatprep.subr.bf16.mxu0 %v1826_v3  ;;  %v1816_v7 = vmul.f32 %v2779_v5, %v3616_v17 }
 0x9b0   :  { %2784 = vrcp.f32 %v1783_v46  ;;  %v1817_v12 = vmul.f32 %v2781_v35, %v3614_v55 }
 0x9b1   :  { %2786 = vrcp.f32 %v1787_v61 }
 0x9b2   :  { %2788 = vrcp.f32 %v1789_v6  ;;  %v1827_v38 = vpack.c.bf16 %v1817_v12, %v1816_v7  ;;  %v2783_v21 = vpop.eup %2782  ;;  %v2791_v7 = vld [vmem:[#allocation2] sm:$0xff] }
 0x9b3   :  { %v1251_v14 = vpop.permute.xlu1 %1250  ;;  %v1256_v15 = vpop.permute.xlu0 %1255  ;;  %v1819_v34 = vmul.f32 %v2783_v21, %v3620_v19 }
 0x9b4   :  { %v1483_v13 = vadd.f32 %v3634_v22, %v1251_v14  ;;  %v1486_v18 = vadd.f32 %v3638_v24, %v1256_v15  ;;  %2548 = vmatpush3.bf16.xpose.msra.mxu0 %v1826_v3  ;;  %v2790_v3 = vld [vmem:[#allocation2 + $0x10] sm:$0xff]  ;;  %v2792_v15 = vld [vmem:[#allocation2 + $0x18] sm:$0xff] }
 0x9b5   :  { %2549 = vmatprep.subr.bf16.mxu0 %v1827_v38 }
 0x9b6   :  { %v1521_v9 = vpack.c.bf16 %v1486_v18, %v1483_v13  ;;  %v2793_v13 = vld [vmem:[#allocation2 + $0x8] sm:$0xff] }
 0x9b7   :  { %v1261_v20 = vpop.permute.xlu1 %1260  ;;  %v1271_v26 = vpop.permute.xlu0 %1270 }
 0x9b8   :  { %2555 = vmatprep.mubr.bf16.mxu0 %v1521_v9  ;;  %v1491_v36 = vadd.f32 %v3632_v44, %v1261_v20  ;;  %v1499_v56 = vadd.f32 %v3642_v29, %v1271_v26 }
 0x9ba   :  { %v2785_v25 = vpop.eup %2784 }
 0x9bb   :  { %v2787_v17 = vpop.eup %2786  ;;  %v1266_v27 = vpop.permute.xlu1 %1265  ;;  %v1818_v55 = vmul.f32 %v2785_v25, %v3629_v42 }
 0x9bc   :  { %v2789_v28 = vpop.eup %2788  ;;  %v1494_v22 = vadd.f32 %v3636_v57, %v1266_v27  ;;  %2550 = vmatpush3.bf16.xpose.msra.mxu0 %v1827_v38  ;;  %v1820_v48 = vmul.f32 %v2787_v17, %v3625_v41  ;;  %v1281_v37 = vpop.permute.xlu0 %1280 }
 0x9bd   :  { %v1828_v24 = vpack.c.bf16 %v1819_v34, %v1818_v55  ;;  %v1821_v50 = vmul.f32 %v2789_v28, %v3623_v40  ;;  %v1507_v44 = vadd.f32 %v3640_v59, %v1281_v37  ;;  %v2706_v40 = vld [vmem:[#allocation16] sm:$0xff]   ;;  %v2794_v55 = vld [vmem:[#allocation2 + $0x30] sm:$0xff] }
 0x9be   :  { %v1522_v32 = vpack.c.bf16 %v1494_v22, %v1491_v36  ;;  %2571 = vmatprep.mubr.msk.bf16.mxu1 %vm413_vm0, %v2706_v40  ;;  %v2795_v22 = vld [vmem:[#allocation2 + $0x20] sm:$0xff] }
 0x9bf   :  { %v1276_v47 = vpop.permute.xlu1 %1275  ;;  %2551 = vmatprep.subr.bf16.mxu0 %v1828_v24  ;;  %v1829_v49 = vpack.c.bf16 %v1821_v50, %v1820_v48  ;;  %v2797_v50 = vld [vmem:[#allocation2 + $0x28] sm:$0xff] }
 0x9c0   :  { %v1502_v42 = vadd.f32 %v3646_v2, %v1276_v47  ;;  %v1902_v43 = vpop.permute.xlu0 %1901  ;;  %v2796_v47 = vld [vmem:[#allocation2 + $0x38] sm:$0xff] }
 0x9c2   :  { %v1523_v19 = vpack.c.bf16 %v1502_v42, %v1499_v56 }
 0x9c3   :  { %v1286_v51 = vpop.permute.xlu1 %1285 }
 0x9c4   :  { %v1510_v57 = vadd.f32 %v3644_v1, %v1286_v51  ;;  %2552 = vmatpush3.bf16.xpose.msra.mxu0 %v1828_v24  ;;  %v1912_v58 = vpop.permute.xlu0 %1911 }
 0x9c5   :  { %2553 = vmatprep.subr.bf16.mxu0 %v1829_v49 }
 0x9c6   :  { %v1524_v53 = vpack.c.bf16 %v1510_v57, %v1507_v44 }
 0x9c7   :  { %v1907_v45 = vpop.permute.xlu1 %1906 }
 0x9c8   :  { %v1922_v61 = vpop.permute.xlu0 %1921 }
 0x9cb   :  { %v1917_v16 = vpop.permute.xlu1 %1916 }
 0x9cc   :  { %2554 = vmatpush3.bf16.xpose.msra.mxu0 %v1829_v49  ;;  %v1932_v9 = vpop.permute.xlu0 %1931 }
 0x9cf   :  { %v1927_v46 = vpop.permute.xlu1 %1926 }
 0x9d3   :  { %2556 = vmatmul.mubr.bf16.vlgmr.msra.gmra.mrb[40].mxu0 %v1522_v32  ;;  %v1937_v17 = vpop.permute.xlu1 %1936 }
 0x9d4   :  { %2559 = vmatprep.mubr.bf16.mxu0 %v1523_v19 }
 0x9db   :  { %2560 = vmatmul.mubr.bf16.gmra.mrb[44].mxu0 %v1524_v53 }
 0xaa6   :  { %v2557_v41 = vpop.f32.mrb[40].mxu0 }
 0xaa7   :  { %v1864_v29 = vpop.f32.mrb[41].mxu0 }
 0xaa8   :  { %v2558_v2 = vpop.f32.mrb[42].mxu0 }
 0xaa9   :  { %v1896_v31 = vpack.c.bf16 %v2558_v2, %v2557_v41  ;;  %v1867_v0 = vpop.f32.mrb[43].mxu0 }
 0xaaa   :  { %v1895_v11 = vpack.c.bf16 %v1867_v0, %v1864_v29 }
 0xaac   :  { %2563 = vmatprep.subr.bf16.mxu1 %v1895_v11 }
 0xaad   :  { %2564 = vmatpush3.bf16.msra.mxu1 %v1895_v11 }
 0xaae   :  { %v2561_v59 = vpop.f32.mrb[44].mxu0  ;;  %2565 = vmatprep.subr.bf16.mxu1 %v1896_v31 }
 0xaaf   :  { %v1880_v1 = vpop.f32.mrb[45].mxu0 }
 0xab0   :  { %v2562_v4 = vpop.f32.mrb[46].mxu0 }
 0xab1   :  { %v1898_v30 = vpack.c.bf16 %v2562_v4, %v2561_v59  ;;  %v1883_v54 = vpop.f32.mrb[47].mxu0  ;;  %2566 = vmatpush3.bf16.msra.mxu1 %v1896_v31 }
 0xab2   :  { %v1897_v10 = vpack.c.bf16 %v1883_v54, %v1880_v1 }
 0xab4   :  { %2567 = vmatprep.subr.bf16.mxu1 %v1897_v10 }
 0xab5   :  { %2568 = vmatpush3.bf16.msra.mxu1 %v1897_v10 }
 0xab6   :  { %2569 = vmatprep.subr.bf16.mxu1 %v1898_v30 }
 0xab9   :  { %2570 = vmatpush3.bf16.msra.mxu1 %v1898_v30 }
 0xabc   :  { %2572 = vmatmul.mubr.msk.bf16.vlgmr.msra.gmra.mrb[48].mxu1 %vm413_vm0, %v2707_v39 }
 0xabd   :  { %2575 = vmatprep.mubr.msk.bf16.mxu1 %vm413_vm0, %v2708_v8 }
 0xac4   :  { %2576 = vmatmul.mubr.msk.bf16.gmra.mrb[52].mxu1 %vm413_vm0, %v2709_v52 }
 0xb8f   :  { %v2573_v23 = vpop.f32.mrb[48].mxu1 }
 0xb90   :  { %v2014_v33 = vadd.f32 %v2573_v23, %v1912_v58  ;;  %v2005_v60 = vpop.f32.mrb[49].mxu1 }
 0xb91   :  { %v2006_v62 = vadd.f32 %v2005_v60, %v1902_v43  ;;  %v2574_v63 = vpop.f32.mrb[50].mxu1 }
 0xb92   :  { %v2038_v5 = vadd.f32 %v2790_v3, %v2014_v33  ;;  %v2017_v35 = vadd.f32 %v2574_v63, %v1917_v16  ;;  %v2008_v6 = vpop.f32.mrb[51].mxu1 }
 0xb93   :  { %v2036_v12 = vadd.f32 %v2791_v7, %v2006_v62  ;;  %v2009_v14 = vadd.f32 %v2008_v6, %v1907_v45 }
 0xb94   :  { %2046 = vst [vmem:[#allocation20 + $0x10] sm:$0xff] %v2038_v5  ;;  %v2039_v38 = vadd.f32 %v2792_v15, %v2017_v35 }
 0xb95   :  { %2044 = vst [vmem:[#allocation20] sm:$0xff] %v2036_v12  ;;  %v2037_v18 = vadd.f32 %v2793_v13, %v2009_v14 }
 0xb96   :  { %2047 = vst [vmem:[#allocation20 + $0x18] sm:$0xff] %v2039_v38 }
 0xb97   :  { %2045 = vst [vmem:[#allocation20 + $0x8] sm:$0xff] %v2037_v18  ;;  %v2577_v20 = vpop.f32.mrb[52].mxu1 }
 0xb98   :  { %v2030_v21 = vadd.f32 %v2577_v20, %v1932_v9  ;;  %v2021_v25 = vpop.f32.mrb[53].mxu1 }
 0xb99   :  { %v2022_v26 = vadd.f32 %v2021_v25, %v1922_v61  ;;  %v2578_v27 = vpop.f32.mrb[54].mxu1 }
 0xb9a   :  { %v2042_v34 = vadd.f32 %v2794_v55, %v2030_v21  ;;  %v2033_v28 = vadd.f32 %v2578_v27, %v1937_v17  ;;  %v2024_v36 = vpop.f32.mrb[55].mxu1 }
 0xb9b   :  { %v2040_v24 = vadd.f32 %v2795_v22, %v2022_v26  ;;  %v2025_v32 = vadd.f32 %v2024_v36, %v1927_v46 }
 0xb9c   :  { %2050 = vst [vmem:[#allocation20 + $0x30] sm:$0xff] %v2042_v34  ;;  %v2043_v48 = vadd.f32 %v2796_v47, %v2033_v28 }
 0xb9d   :  { %2048 = vst [vmem:[#allocation20 + $0x20] sm:$0xff] %v2040_v24  ;;  %v2041_v56 = vadd.f32 %v2797_v50, %v2025_v32 }
 0xb9e   :  { %2051 = vst [vmem:[#allocation20 + $0x38] sm:$0xff] %v2043_v48 }
 0xb9f   :  { %2049 = vst [vmem:[#allocation20 + $0x28] sm:$0xff] %v2041_v56 }
 0xba0   :  { %3051 = shalt.err (!%p3048_p8)
}
 0xba1   :  { %s3052_s5 = scalar_lea.hbm %s3702_s11, 1024 }
 0xba2   :  { %p3053_p9 = scmp.ne.s32.totalorder %s3702_s11, %s3052_s5  ;;  %p3056_p10 = scmp.lt.u32.totalorder %s3052_s5, %s3702_s11 }
 0xba4   :  { %p3058_p11 = pnand %p3056_p10, %p3053_p9 }
 0xba6   :  { %3061 = shalt.err (!%p3058_p11)
}
 0xba7   :  { %2063 = dma.vmem_to_hbm [thread:$0]  %s2058_s18, 1024, %s3702_s11, [#allocation4], %s3078_s29, %s3078_s29, %s3079_s30  }
 0xba8   :  { %3074 = dma.done.wait [#allocation4], 1024  }
 0xba9   :  { %3075 = vsyncadd [#allocation4], 4294966272 }
 0xbaa   :  { %2067 = vsyncpa [#allocation3], 1 }
 0xbab   :  { %2068 = vsyncpa [#allocation6], 1 }
 0xbac   :  { %2069 = vsyncpa [#allocation9], 1 }
 0xbad   :  { %2070 = vsyncpa [#allocation12], 1 }
 0xbae   :  { %2071 = vsyncpa [#allocation15], 1 }
 0xbaf   :  { %2072 = vsyncpa [#allocation18], 1 }
 0xbb0   :  { %2073 = vsyncpa [#allocation4], 1 }

</bundles_post_ra>
